<compile_context>
chip_gen: v6e
topology: v6e:2x2x1
jax: 0.10.0
libtpu: 0.0.40
codegen_flags: <defaults>
</compile_context>

<pallas_src>
import jax
import jax.numpy as jnp
from jax.experimental import pallas as pl
from jax.experimental.pallas import tpu as pltpu

# Keep all matmuls in full f32 precision (reference, weight prep, and — via
# bind-time canonicalization — the dots traced inside the Pallas kernel).
jax.config.update("jax_default_matmul_precision", "highest")

# ----------------------------- config (synthetic) -----------------------------
B = 2          # batch
S = 8          # seq_len
D_MODEL = 32   # cfg.d_model (concat_pos_emb = False -> model width = d_model)
N_HEADS = 4    # cfg.n_heads
D_HEAD = 8     # cfg.d_head
D_FFN = 64     # cfg.d_ffn
LN_EPS = 1e-5  # nn.LayerNorm default
SCALE = D_HEAD ** (-0.5)
HD = N_HEADS * D_HEAD
NEG_INF = -1e30

VMEM_LIMIT_BYTES = 32 * 1024 * 1024   # explicit scoped-VMEM budget (fits all gens)


def encoder_kernel(x_ref, mask_ref, wqkv_ref, bqkv_ref, wo2_ref,
                   w1_ref, b1_ref, w2_ref, b2_ref, out_ref):
    x = x_ref[...]            # (bs, D) flat token slab (bs = block_b * S)
    mask = mask_ref[...]      # (bs, bs) block-diagonal additive mask (0 / -1e30)

    def norm(v):
        # LayerNorm affine (gamma/beta) is folded into the adjacent matmul
        # weights at prep time, so only mean / rsqrt remain here.
        mu = jnp.mean(v, axis=-1, keepdims=True)
        var = jnp.mean((v - mu) ** 2, axis=-1, keepdims=True)
        return (v - mu) * jax.lax.rsqrt(var + LN_EPS)

    # ---- self_att_norm + fused QKV projection (one MXU push) ----
    h = norm(x)
    qkv = jnp.dot(h, wqkv_ref[...], preferred_element_type=jnp.float32) + bqkv_ref[...]

    # ---- attention core, batched over the whole slab ----
    # Cross-batch score entries get -1e30 added BEFORE the row-max subtraction,
    # so their probabilities are exactly 0 and results match per-batch attention.
    heads = []
    for hd in range(N_HEADS):
        c = hd * D_HEAD
        q = qkv[:, c:c + D_HEAD]                       # (bs, Dh), scale pre-folded
        k = qkv[:, HD + c:HD + c + D_HEAD]             # (bs, Dh)
        v = qkv[:, 2 * HD + c:2 * HD + c + D_HEAD]     # (bs, Dh)

        # scores = q @ k^T without an explicit transpose (contract last axes)
        s = jax.lax.dot_general(q, k, (((1,), (1,)), ((), ())),
                                preferred_element_type=jnp.float32) + mask
        m = jnp.max(s, axis=-1, keepdims=True)
        e = jnp.exp(s - m)
        p = e / jnp.sum(e, axis=-1, keepdims=True)     # exact softmax normalization
        # att_dropout: eval mode -> identity

        heads.append(jnp.dot(p, v, preferred_element_type=jnp.float32))  # (bs, Dh)

    o_cat = jnp.concatenate(heads, axis=-1)            # (bs, HD)

    # concat-over-heads + output_layer == single (HD, D) matmul
    att = jnp.dot(o_cat, wo2_ref[...], preferred_element_type=jnp.float32)
    mid = x + att                                      # residual_mid

    # ---- ffn_norm + FFN (ln2 affine folded into w1/b1) ----
    h2 = norm(mid)
    f = jnp.dot(h2, w1_ref[...], preferred_element_type=jnp.float32) + b1_ref[...]
    # TODO(synk): cfg.ffn_activation is config-defined; PyTorch nn.GELU() default
    #             is the exact erf form, we use the tanh approximation.
    f = jax.nn.gelu(f, approximate=True)
    f = jnp.dot(f, w2_ref[...], preferred_element_type=jnp.float32) + b2_ref[...]
    # fnn_dropout: eval mode -> identity

    out_ref[...] = mid + f                             # residual_post


def _choose_block_b(vmem_budget_bytes=VMEM_LIMIT_BYTES):
    """Largest batch block that fits the scoped-VMEM budget.

    At this synthetic config the whole batch always fits, so we run a single
    fused grid step (per-step fixed cost ~0.35 us would dominate a serial grid
    of 2 on single-TC chips).  The guard only matters once d_model / seq / B
    are scaled up.
    TODO(synk): on v7x (2 TensorCores) benchmark block_b=1 with grid=(B,)
                "parallel" against this single fused step before committing.
    """
    f32 = 4
    weight_bytes = f32 * (D_MODEL * 3 * HD + 3 * HD + HD * D_MODEL
                          + D_MODEL * D_FFN + D_FFN + D_FFN * D_MODEL + D_MODEL)
    bb = B
    while bb > 1:
        bs = bb * S
        act_bytes = f32 * (2 * (2 * bs * D_MODEL + bs * bs)        # dbl-buffered blocks
                           + bs * (3 * HD + HD + 4 * D_MODEL + D_FFN)  # activations
                           + N_HEADS * bs * bs)                    # score working set
        if weight_bytes + act_bytes <= vmem_budget_bytes:
            break
        bb //= 2
    return bb


def make_block_mask(block_b):
    """Additive attention mask: 0 on diagonal SxS blocks, -1e30 elsewhere."""
    idx = jnp.arange(block_b * S) // S
    return jnp.where(idx[:, None] == idx[None, :], 0.0, NEG_INF).astype(jnp.float32)


def encoder_forward(x, kp, *, block_b):
    """x: (B, S, D) float32.  kp: kernel-ready (fused) params."""
    assert B % block_b == 0
    bs = block_b * S
    x_flat = x.reshape(B * S, D_MODEL)     # flat token slab; free reshape in XLA
    mask = make_block_mask(block_b)

    full = lambda shape: pl.BlockSpec(shape, lambda b: tuple(0 for _ in shape))
    in_specs = [
        pl.BlockSpec((bs, D_MODEL), lambda b: (b, 0)),   # x (flattened tokens)
        full((bs, bs)),                                  # block-diagonal mask
        full((D_MODEL, 3 * HD)), full((1, 3 * HD)),      # fused qkv weight / bias
        full((HD, D_MODEL)),                             # output projection
        full((D_MODEL, D_FFN)), full((1, D_FFN)),        # ffn layer1 (ln2 folded)
        full((D_FFN, D_MODEL)), full((1, D_MODEL)),      # ffn layer2
    ]
    out_spec = pl.BlockSpec((bs, D_MODEL), lambda b: (b, 0))

    y = pl.pallas_call(
        encoder_kernel,
        out_shape=jax.ShapeDtypeStruct((B * S, D_MODEL), jnp.float32),
        grid_spec=pltpu.PrefetchScalarGridSpec(
            num_scalar_prefetch=0,
            grid=(B // block_b,),
            in_specs=in_specs,
            out_specs=out_spec,
        ),
        compiler_params=pltpu.CompilerParams(
            dimension_semantics=("parallel",),
            vmem_limit_bytes=VMEM_LIMIT_BYTES),
    )(x_flat, mask, kp["wqkv"], kp["bqkv"], kp["wo2"],
      kp["w1"], kp["b1"], kp["w2"], kp["b2"])
    return y.reshape(B, S, D_MODEL)


def init_params(key):
    """Deterministic synthetic init (weights stored (in, out) per head)."""
    ks = jax.random.split(key, 12)

    def lin(k, fan_in, shape):
        return jax.random.normal(k, shape, jnp.float32) / jnp.sqrt(fan_in)

    wq = lin(ks[0], D_MODEL, (D_MODEL, HD)).reshape(D_MODEL, N_HEADS, D_HEAD).transpose(1, 0, 2)
    wk = lin(ks[1], D_MODEL, (D_MODEL, HD)).reshape(D_MODEL, N_HEADS, D_HEAD).transpose(1, 0, 2)
    wv = lin(ks[2], D_MODEL, (D_MODEL, HD)).reshape(D_MODEL, N_HEADS, D_HEAD).transpose(1, 0, 2)
    wo = lin(ks[3], HD, (HD, D_MODEL)).reshape(N_HEADS, D_HEAD, D_MODEL)

    return dict(
        # non-trivial LN affines so the weight folding is actually exercised
        ln1_g=1.0 + 0.1 * jax.random.normal(ks[8], (1, D_MODEL), jnp.float32),
        ln1_b=0.05 * jax.random.normal(ks[9], (1, D_MODEL), jnp.float32),
        wq=wq, wk=wk, wv=wv, wo=wo,
        ln2_g=1.0 + 0.1 * jax.random.normal(ks[10], (1, D_MODEL), jnp.float32),
        ln2_b=0.05 * jax.random.normal(ks[11], (1, D_MODEL), jnp.float32),
        w1=lin(ks[4], D_MODEL, (D_MODEL, D_FFN)),
        b1=0.01 * jax.random.normal(ks[5], (1, D_FFN), jnp.float32),
        w2=lin(ks[6], D_FFN, (D_FFN, D_MODEL)),
        b2=0.01 * jax.random.normal(ks[7], (1, D_MODEL), jnp.float32),
    )


def prepare_kernel_params(p):
    """One-time folding into kernel-ready layout (not a per-call op).

    * Q/K/V weights concatenated into one (D, 3*HD) matrix, softmax scale
      folded into the Q columns.
    * LayerNorm affines folded into the adjacent matmul:
        (n*g + b) @ W == n @ (g[:, None] * W) + (b @ W)
      so the in-kernel norm is mean/rsqrt only.
    """
    wq_flat = p["wq"].transpose(1, 0, 2).reshape(D_MODEL, HD) * SCALE
    wk_flat = p["wk"].transpose(1, 0, 2).reshape(D_MODEL, HD)
    wv_flat = p["wv"].transpose(1, 0, 2).reshape(D_MODEL, HD)
    wqkv = jnp.concatenate([wq_flat, wk_flat, wv_flat], axis=-1)     # (D, 3*HD)
    bqkv = p["ln1_b"] @ wqkv                                         # (1, 3*HD)
    wqkv = p["ln1_g"][0][:, None] * wqkv                             # fold gamma1

    w1 = p["ln2_g"][0][:, None] * p["w1"]                            # fold gamma2
    b1 = p["b1"] + p["ln2_b"] @ p["w1"]                              # fold beta2

    return dict(
        wqkv=wqkv, bqkv=bqkv,
        wo2=p["wo"].reshape(HD, D_MODEL),                            # (HD, D)
        w1=w1, b1=b1, w2=p["w2"], b2=p["b2"],
    )


def encoder_ref(x, p):
    """Pure-JAX reference mirroring the PyTorch forward (eval mode)."""
    def ln(v, g, b):
        mu = jnp.mean(v, -1, keepdims=True)
        var = jnp.mean((v - mu) ** 2, -1, keepdims=True)
        return (v - mu) * jax.lax.rsqrt(var + LN_EPS) * g[0] + b[0]

    h = ln(x, p["ln1_g"], p["ln1_b"])
    q = jnp.einsum("bsd,hdk->bhsk", h, p["wq"])
    k = jnp.einsum("bsd,hdk->bhsk", h, p["wk"])
    v = jnp.einsum("bsd,hdk->bhsk", h, p["wv"])
    scores = jnp.einsum("bhqk,bhsk->bhqs", q, k) * SCALE
    w = jax.nn.softmax(scores, axis=-1)
    o = jnp.einsum("bhqs,bhsk->bhqk", w, v)
    att = jnp.einsum("bhqk,hkd->bqd", o, p["wo"])
    mid = x + att
    h2 = ln(mid, p["ln2_g"], p["ln2_b"])
    f = jax.nn.gelu(h2 @ p["w1"] + p["b1"][0], approximate=True) @ p["w2"] + p["b2"][0]
    return mid + f


if __name__ == "__main__":
    key = jax.random.PRNGKey(0)
    kx, kparam = jax.random.split(key)
    x = jax.random.normal(kx, (B, S, D_MODEL), jnp.float32)
    params = init_params(kparam)
    kparams = prepare_kernel_params(params)

    block_b = _choose_block_b()
    out = encoder_forward(x, kparams, block_b=block_b)
    out = jax.block_until_ready(out)

    ref = encoder_ref(x, params)
    assert out.shape == (B, S, D_MODEL)
    err = float(jnp.max(jnp.abs(out - ref)))
    assert err < 1e-3, f"mismatch vs JAX reference: max abs err = {err}"

    print("KERNEL_OK")
</pallas_src>

<mosaic_0001>
module attributes {stable_mosaic.version = 11 : i64} {
  func.func @encoder_kernel(%arg0: i32, %arg1: memref<16x32xf32, #tpu.memory_space<vmem>>, %arg2: memref<16x16xf32, #tpu.memory_space<vmem>>, %arg3: memref<32x96xf32, #tpu.memory_space<vmem>>, %arg4: memref<1x96xf32, #tpu.memory_space<vmem>>, %arg5: memref<32x32xf32, #tpu.memory_space<vmem>>, %arg6: memref<32x64xf32, #tpu.memory_space<vmem>>, %arg7: memref<1x64xf32, #tpu.memory_space<vmem>>, %arg8: memref<64x32xf32, #tpu.memory_space<vmem>>, %arg9: memref<1x32xf32, #tpu.memory_space<vmem>>, %arg10: memref<16x32xf32, #tpu.memory_space<vmem>>) attributes {dimension_semantics = [#tpu.dimension_semantics<parallel>], iteration_bounds = array<i64: 1>, scalar_prefetch = 0 : i64, scratch_operands = 0 : i64, tpu.core_type = #tpu.core_type<tc>, window_params = [{transform_indices = @transform_0, window_bounds = array<i64: 16, 32>}, {pipeline_mode = #tpu.pipeline_mode<synchronous>, transform_indices = @transform_1, window_bounds = array<i64: 16, 16>}, {pipeline_mode = #tpu.pipeline_mode<synchronous>, transform_indices = @transform_2, window_bounds = array<i64: 32, 96>}, {pipeline_mode = #tpu.pipeline_mode<synchronous>, transform_indices = @transform_3, window_bounds = array<i64: 1, 96>}, {pipeline_mode = #tpu.pipeline_mode<synchronous>, transform_indices = @transform_4, window_bounds = array<i64: 32, 32>}, {pipeline_mode = #tpu.pipeline_mode<synchronous>, transform_indices = @transform_5, window_bounds = array<i64: 32, 64>}, {pipeline_mode = #tpu.pipeline_mode<synchronous>, transform_indices = @transform_6, window_bounds = array<i64: 1, 64>}, {pipeline_mode = #tpu.pipeline_mode<synchronous>, transform_indices = @transform_7, window_bounds = array<i64: 64, 32>}, {pipeline_mode = #tpu.pipeline_mode<synchronous>, transform_indices = @transform_8, window_bounds = array<i64: 1, 32>}, {transform_indices = @transform_9, window_bounds = array<i64: 16, 32>}]} {
    %c0 = arith.constant 0 : index
    %c0_0 = arith.constant 0 : index
    %0 = vector.load %arg1[%c0, %c0_0] : memref<16x32xf32, #tpu.memory_space<vmem>>, vector<16x32xf32>
    %c0_1 = arith.constant 0 : index
    %c0_2 = arith.constant 0 : index
    %1 = vector.load %arg2[%c0_1, %c0_2] : memref<16x16xf32, #tpu.memory_space<vmem>>, vector<16x16xf32>
    %cst = arith.constant dense<0.000000e+00> : vector<16xf32>
    %2 = vector.multi_reduction <add>, %0, %cst [1] : vector<16x32xf32> to vector<16xf32>
    %3 = vector.shape_cast %2 : vector<16xf32> to vector<16x1xf32>
    %cst_3 = arith.constant 3.200000e+01 : f32
    %4 = vector.broadcast %cst_3 : f32 to vector<16x1xf32>
    %5 = arith.divf %3, %4 : vector<16x1xf32>
    %6 = vector.broadcast %5 : vector<16x1xf32> to vector<16x32xf32>
    %7 = arith.subf %0, %6 : vector<16x32xf32>
    %8 = arith.mulf %7, %7 : vector<16x32xf32>
    %cst_4 = arith.constant dense<0.000000e+00> : vector<16xf32>
    %9 = vector.multi_reduction <add>, %8, %cst_4 [1] : vector<16x32xf32> to vector<16xf32>
    %10 = vector.shape_cast %9 : vector<16xf32> to vector<16x1xf32>
    %cst_5 = arith.constant 3.200000e+01 : f32
    %11 = vector.broadcast %cst_5 : f32 to vector<16x1xf32>
    %12 = arith.divf %10, %11 : vector<16x1xf32>
    %13 = vector.broadcast %5 : vector<16x1xf32> to vector<16x32xf32>
    %14 = arith.subf %0, %13 : vector<16x32xf32>
    %cst_6 = arith.constant 9.99999974E-6 : f32
    %15 = vector.broadcast %cst_6 : f32 to vector<16x1xf32>
    %16 = arith.addf %12, %15 : vector<16x1xf32>
    %17 = math.rsqrt %16 : vector<16x1xf32>
    %18 = vector.broadcast %17 : vector<16x1xf32> to vector<16x32xf32>
    %19 = arith.mulf %14, %18 : vector<16x32xf32>
    %c0_7 = arith.constant 0 : index
    %c0_8 = arith.constant 0 : index
    %20 = vector.load %arg3[%c0_7, %c0_8] : memref<32x96xf32, #tpu.memory_space<vmem>>, vector<32x96xf32>
    %cst_9 = arith.constant dense<0.000000e+00> : vector<16x96xf32>
    %21 = tpu.matmul %19, %20, %cst_9 {dimension_numbers = #tpu.dot_dimension_numbers<[1], [0], [0], [1], [0, 0, 1, 1], [], []>, precision = #tpu.contract_precision<fp32>} : vector<16x32xf32>, vector<32x96xf32>, vector<16x96xf32> -> vector<16x96xf32>
    %c0_10 = arith.constant 0 : index
    %c0_11 = arith.constant 0 : index
    %22 = vector.load %arg4[%c0_10, %c0_11] : memref<1x96xf32, #tpu.memory_space<vmem>>, vector<1x96xf32>
    %23 = vector.broadcast %22 : vector<1x96xf32> to vector<16x96xf32>
    %24 = arith.addf %21, %23 : vector<16x96xf32>
    %25 = vector.extract_strided_slice %24 {offsets = [0, 0], sizes = [16, 8], strides = [1, 1]} : vector<16x96xf32> to vector<16x8xf32>
    %26 = vector.extract_strided_slice %24 {offsets = [0, 32], sizes = [16, 8], strides = [1, 1]} : vector<16x96xf32> to vector<16x8xf32>
    %27 = vector.extract_strided_slice %24 {offsets = [0, 64], sizes = [16, 8], strides = [1, 1]} : vector<16x96xf32> to vector<16x8xf32>
    %cst_12 = arith.constant dense<0.000000e+00> : vector<16x16xf32>
    %28 = tpu.matmul %25, %26, %cst_12 {dimension_numbers = #tpu.dot_dimension_numbers<[1], [1], [0], [0], [0, 0, 1, 0], [], []>, precision = #tpu.contract_precision<fp32>} : vector<16x8xf32>, vector<16x8xf32>, vector<16x16xf32> -> vector<16x16xf32>
    %29 = arith.addf %28, %1 : vector<16x16xf32>
    %cst_13 = arith.constant dense<0xFF800000> : vector<16xf32>
    %30 = vector.multi_reduction <maximumf>, %29, %cst_13 [1] : vector<16x16xf32> to vector<16xf32>
    %31 = vector.shape_cast %30 : vector<16xf32> to vector<16x1xf32>
    %32 = vector.broadcast %31 : vector<16x1xf32> to vector<16x16xf32>
    %33 = arith.subf %29, %32 : vector<16x16xf32>
    %34 = math.exp %33 : vector<16x16xf32>
    %cst_14 = arith.constant dense<0.000000e+00> : vector<16xf32>
    %35 = vector.multi_reduction <add>, %34, %cst_14 [1] : vector<16x16xf32> to vector<16xf32>
    %36 = vector.shape_cast %35 : vector<16xf32> to vector<16x1xf32>
    %37 = vector.broadcast %36 : vector<16x1xf32> to vector<16x16xf32>
    %38 = arith.divf %34, %37 : vector<16x16xf32>
    %cst_15 = arith.constant dense<0.000000e+00> : vector<16x8xf32>
    %39 = tpu.matmul %38, %27, %cst_15 {dimension_numbers = #tpu.dot_dimension_numbers<[1], [0], [0], [1], [0, 0, 1, 1], [], []>, precision = #tpu.contract_precision<fp32>} : vector<16x16xf32>, vector<16x8xf32>, vector<16x8xf32> -> vector<16x8xf32>
    %40 = vector.extract_strided_slice %24 {offsets = [0, 8], sizes = [16, 8], strides = [1, 1]} : vector<16x96xf32> to vector<16x8xf32>
    %41 = vector.extract_strided_slice %24 {offsets = [0, 40], sizes = [16, 8], strides = [1, 1]} : vector<16x96xf32> to vector<16x8xf32>
    %42 = vector.extract_strided_slice %24 {offsets = [0, 72], sizes = [16, 8], strides = [1, 1]} : vector<16x96xf32> to vector<16x8xf32>
    %cst_16 = arith.constant dense<0.000000e+00> : vector<16x16xf32>
    %43 = tpu.matmul %40, %41, %cst_16 {dimension_numbers = #tpu.dot_dimension_numbers<[1], [1], [0], [0], [0, 0, 1, 0], [], []>, precision = #tpu.contract_precision<fp32>} : vector<16x8xf32>, vector<16x8xf32>, vector<16x16xf32> -> vector<16x16xf32>
    %44 = arith.addf %43, %1 : vector<16x16xf32>
    %cst_17 = arith.constant dense<0xFF800000> : vector<16xf32>
    %45 = vector.multi_reduction <maximumf>, %44, %cst_17 [1] : vector<16x16xf32> to vector<16xf32>
    %46 = vector.shape_cast %45 : vector<16xf32> to vector<16x1xf32>
    %47 = vector.broadcast %46 : vector<16x1xf32> to vector<16x16xf32>
    %48 = arith.subf %44, %47 : vector<16x16xf32>
    %49 = math.exp %48 : vector<16x16xf32>
    %cst_18 = arith.constant dense<0.000000e+00> : vector<16xf32>
    %50 = vector.multi_reduction <add>, %49, %cst_18 [1] : vector<16x16xf32> to vector<16xf32>
    %51 = vector.shape_cast %50 : vector<16xf32> to vector<16x1xf32>
    %52 = vector.broadcast %51 : vector<16x1xf32> to vector<16x16xf32>
    %53 = arith.divf %49, %52 : vector<16x16xf32>
    %cst_19 = arith.constant dense<0.000000e+00> : vector<16x8xf32>
    %54 = tpu.matmul %53, %42, %cst_19 {dimension_numbers = #tpu.dot_dimension_numbers<[1], [0], [0], [1], [0, 0, 1, 1], [], []>, precision = #tpu.contract_precision<fp32>} : vector<16x16xf32>, vector<16x8xf32>, vector<16x8xf32> -> vector<16x8xf32>
    %55 = vector.extract_strided_slice %24 {offsets = [0, 16], sizes = [16, 8], strides = [1, 1]} : vector<16x96xf32> to vector<16x8xf32>
    %56 = vector.extract_strided_slice %24 {offsets = [0, 48], sizes = [16, 8], strides = [1, 1]} : vector<16x96xf32> to vector<16x8xf32>
    %57 = vector.extract_strided_slice %24 {offsets = [0, 80], sizes = [16, 8], strides = [1, 1]} : vector<16x96xf32> to vector<16x8xf32>
    %cst_20 = arith.constant dense<0.000000e+00> : vector<16x16xf32>
    %58 = tpu.matmul %55, %56, %cst_20 {dimension_numbers = #tpu.dot_dimension_numbers<[1], [1], [0], [0], [0, 0, 1, 0], [], []>, precision = #tpu.contract_precision<fp32>} : vector<16x8xf32>, vector<16x8xf32>, vector<16x16xf32> -> vector<16x16xf32>
    %59 = arith.addf %58, %1 : vector<16x16xf32>
    %cst_21 = arith.constant dense<0xFF800000> : vector<16xf32>
    %60 = vector.multi_reduction <maximumf>, %59, %cst_21 [1] : vector<16x16xf32> to vector<16xf32>
    %61 = vector.shape_cast %60 : vector<16xf32> to vector<16x1xf32>
    %62 = vector.broadcast %61 : vector<16x1xf32> to vector<16x16xf32>
    %63 = arith.subf %59, %62 : vector<16x16xf32>
    %64 = math.exp %63 : vector<16x16xf32>
    %cst_22 = arith.constant dense<0.000000e+00> : vector<16xf32>
    %65 = vector.multi_reduction <add>, %64, %cst_22 [1] : vector<16x16xf32> to vector<16xf32>
    %66 = vector.shape_cast %65 : vector<16xf32> to vector<16x1xf32>
    %67 = vector.broadcast %66 : vector<16x1xf32> to vector<16x16xf32>
    %68 = arith.divf %64, %67 : vector<16x16xf32>
    %cst_23 = arith.constant dense<0.000000e+00> : vector<16x8xf32>
    %69 = tpu.matmul %68, %57, %cst_23 {dimension_numbers = #tpu.dot_dimension_numbers<[1], [0], [0], [1], [0, 0, 1, 1], [], []>, precision = #tpu.contract_precision<fp32>} : vector<16x16xf32>, vector<16x8xf32>, vector<16x8xf32> -> vector<16x8xf32>
    %70 = vector.extract_strided_slice %24 {offsets = [0, 24], sizes = [16, 8], strides = [1, 1]} : vector<16x96xf32> to vector<16x8xf32>
    %71 = vector.extract_strided_slice %24 {offsets = [0, 56], sizes = [16, 8], strides = [1, 1]} : vector<16x96xf32> to vector<16x8xf32>
    %72 = vector.extract_strided_slice %24 {offsets = [0, 88], sizes = [16, 8], strides = [1, 1]} : vector<16x96xf32> to vector<16x8xf32>
    %cst_24 = arith.constant dense<0.000000e+00> : vector<16x16xf32>
    %73 = tpu.matmul %70, %71, %cst_24 {dimension_numbers = #tpu.dot_dimension_numbers<[1], [1], [0], [0], [0, 0, 1, 0], [], []>, precision = #tpu.contract_precision<fp32>} : vector<16x8xf32>, vector<16x8xf32>, vector<16x16xf32> -> vector<16x16xf32>
    %74 = arith.addf %73, %1 : vector<16x16xf32>
    %cst_25 = arith.constant dense<0xFF800000> : vector<16xf32>
    %75 = vector.multi_reduction <maximumf>, %74, %cst_25 [1] : vector<16x16xf32> to vector<16xf32>
    %76 = vector.shape_cast %75 : vector<16xf32> to vector<16x1xf32>
    %77 = vector.broadcast %76 : vector<16x1xf32> to vector<16x16xf32>
    %78 = arith.subf %74, %77 : vector<16x16xf32>
    %79 = math.exp %78 : vector<16x16xf32>
    %cst_26 = arith.constant dense<0.000000e+00> : vector<16xf32>
    %80 = vector.multi_reduction <add>, %79, %cst_26 [1] : vector<16x16xf32> to vector<16xf32>
    %81 = vector.shape_cast %80 : vector<16xf32> to vector<16x1xf32>
    %82 = vector.broadcast %81 : vector<16x1xf32> to vector<16x16xf32>
    %83 = arith.divf %79, %82 : vector<16x16xf32>
    %cst_27 = arith.constant dense<0.000000e+00> : vector<16x8xf32>
    %84 = tpu.matmul %83, %72, %cst_27 {dimension_numbers = #tpu.dot_dimension_numbers<[1], [0], [0], [1], [0, 0, 1, 1], [], []>, precision = #tpu.contract_precision<fp32>} : vector<16x16xf32>, vector<16x8xf32>, vector<16x8xf32> -> vector<16x8xf32>
    %85 = tpu.concatenate %39, %54, %69, %84 in 1 : vector<16x8xf32>, vector<16x8xf32>, vector<16x8xf32>, vector<16x8xf32> -> vector<16x32xf32>
    %c0_28 = arith.constant 0 : index
    %c0_29 = arith.constant 0 : index
    %86 = vector.load %arg5[%c0_28, %c0_29] : memref<32x32xf32, #tpu.memory_space<vmem>>, vector<32x32xf32>
    %cst_30 = arith.constant dense<0.000000e+00> : vector<16x32xf32>
    %87 = tpu.matmul %85, %86, %cst_30 {dimension_numbers = #tpu.dot_dimension_numbers<[1], [0], [0], [1], [0, 0, 1, 1], [], []>, precision = #tpu.contract_precision<fp32>} : vector<16x32xf32>, vector<32x32xf32>, vector<16x32xf32> -> vector<16x32xf32>
    %88 = arith.addf %0, %87 : vector<16x32xf32>
    %cst_31 = arith.constant dense<0.000000e+00> : vector<16xf32>
    %89 = vector.multi_reduction <add>, %88, %cst_31 [1] : vector<16x32xf32> to vector<16xf32>
    %90 = vector.shape_cast %89 : vector<16xf32> to vector<16x1xf32>
    %cst_32 = arith.constant 3.200000e+01 : f32
    %91 = vector.broadcast %cst_32 : f32 to vector<16x1xf32>
    %92 = arith.divf %90, %91 : vector<16x1xf32>
    %93 = vector.broadcast %92 : vector<16x1xf32> to vector<16x32xf32>
    %94 = arith.subf %88, %93 : vector<16x32xf32>
    %95 = arith.mulf %94, %94 : vector<16x32xf32>
    %cst_33 = arith.constant dense<0.000000e+00> : vector<16xf32>
    %96 = vector.multi_reduction <add>, %95, %cst_33 [1] : vector<16x32xf32> to vector<16xf32>
    %97 = vector.shape_cast %96 : vector<16xf32> to vector<16x1xf32>
    %cst_34 = arith.constant 3.200000e+01 : f32
    %98 = vector.broadcast %cst_34 : f32 to vector<16x1xf32>
    %99 = arith.divf %97, %98 : vector<16x1xf32>
    %100 = vector.broadcast %92 : vector<16x1xf32> to vector<16x32xf32>
    %101 = arith.subf %88, %100 : vector<16x32xf32>
    %cst_35 = arith.constant 9.99999974E-6 : f32
    %102 = vector.broadcast %cst_35 : f32 to vector<16x1xf32>
    %103 = arith.addf %99, %102 : vector<16x1xf32>
    %104 = math.rsqrt %103 : vector<16x1xf32>
    %105 = vector.broadcast %104 : vector<16x1xf32> to vector<16x32xf32>
    %106 = arith.mulf %101, %105 : vector<16x32xf32>
    %c0_36 = arith.constant 0 : index
    %c0_37 = arith.constant 0 : index
    %107 = vector.load %arg6[%c0_36, %c0_37] : memref<32x64xf32, #tpu.memory_space<vmem>>, vector<32x64xf32>
    %cst_38 = arith.constant dense<0.000000e+00> : vector<16x64xf32>
    %108 = tpu.matmul %106, %107, %cst_38 {dimension_numbers = #tpu.dot_dimension_numbers<[1], [0], [0], [1], [0, 0, 1, 1], [], []>, precision = #tpu.contract_precision<fp32>} : vector<16x32xf32>, vector<32x64xf32>, vector<16x64xf32> -> vector<16x64xf32>
    %c0_39 = arith.constant 0 : index
    %c0_40 = arith.constant 0 : index
    %109 = vector.load %arg7[%c0_39, %c0_40] : memref<1x64xf32, #tpu.memory_space<vmem>>, vector<1x64xf32>
    %110 = vector.broadcast %109 : vector<1x64xf32> to vector<16x64xf32>
    %111 = arith.addf %108, %110 : vector<16x64xf32>
    %112 = arith.mulf %111, %111 : vector<16x64xf32>
    %113 = arith.mulf %111, %112 : vector<16x64xf32>
    %cst_41 = arith.constant 4.471500e-02 : f32
    %114 = vector.broadcast %cst_41 : f32 to vector<16x64xf32>
    %115 = arith.mulf %114, %113 : vector<16x64xf32>
    %116 = arith.addf %111, %115 : vector<16x64xf32>
    %cst_42 = arith.constant 0.797884583 : f32
    %117 = vector.broadcast %cst_42 : f32 to vector<16x64xf32>
    %118 = arith.mulf %117, %116 : vector<16x64xf32>
    %119 = math.tanh %118 : vector<16x64xf32>
    %cst_43 = arith.constant 1.000000e+00 : f32
    %120 = vector.broadcast %cst_43 : f32 to vector<16x64xf32>
    %121 = arith.addf %120, %119 : vector<16x64xf32>
    %cst_44 = arith.constant 5.000000e-01 : f32
    %122 = vector.broadcast %cst_44 : f32 to vector<16x64xf32>
    %123 = arith.mulf %122, %121 : vector<16x64xf32>
    %124 = arith.mulf %111, %123 : vector<16x64xf32>
    %c0_45 = arith.constant 0 : index
    %c0_46 = arith.constant 0 : index
    %125 = vector.load %arg8[%c0_45, %c0_46] : memref<64x32xf32, #tpu.memory_space<vmem>>, vector<64x32xf32>
    %cst_47 = arith.constant dense<0.000000e+00> : vector<16x32xf32>
    %126 = tpu.matmul %124, %125, %cst_47 {dimension_numbers = #tpu.dot_dimension_numbers<[1], [0], [0], [1], [0, 0, 1, 1], [], []>, precision = #tpu.contract_precision<fp32>} : vector<16x64xf32>, vector<64x32xf32>, vector<16x32xf32> -> vector<16x32xf32>
    %c0_48 = arith.constant 0 : index
    %c0_49 = arith.constant 0 : index
    %127 = vector.load %arg9[%c0_48, %c0_49] : memref<1x32xf32, #tpu.memory_space<vmem>>, vector<1x32xf32>
    %128 = vector.broadcast %127 : vector<1x32xf32> to vector<16x32xf32>
    %129 = arith.addf %126, %128 : vector<16x32xf32>
    %130 = arith.addf %88, %129 : vector<16x32xf32>
    %c0_50 = arith.constant 0 : index
    %c0_51 = arith.constant 0 : index
    %131 = vector.load %arg10[%c0_50, %c0_51] : memref<16x32xf32, #tpu.memory_space<vmem>>, vector<16x32xf32>
    tpu.vector_store %arg10[%c0_50, %c0_51], %130 {strides = array<i32>} : memref<16x32xf32, #tpu.memory_space<vmem>>, vector<16x32xf32>,
    return
  }
  func.func @transform_0(%arg0: i32) -> (i32, i32) {
    %c0_i32 = arith.constant 0 : i32
    %c0_i32_0 = arith.constant 0 : i32
    return %arg0, %c0_i32 : i32, i32
  }
  func.func @transform_1(%arg0: i32) -> (i32, i32) {
    %c0_i32 = arith.constant 0 : i32
    %c0_i32_0 = arith.constant 0 : i32
    %c0_i32_1 = arith.constant 0 : i32
    return %c0_i32, %c0_i32_0 : i32, i32
  }
  func.func @transform_2(%arg0: i32) -> (i32, i32) {
    %c0_i32 = arith.constant 0 : i32
    %c0_i32_0 = arith.constant 0 : i32
    %c0_i32_1 = arith.constant 0 : i32
    return %c0_i32, %c0_i32_0 : i32, i32
  }
  func.func @transform_3(%arg0: i32) -> (i32, i32) {
    %c0_i32 = arith.constant 0 : i32
    %c0_i32_0 = arith.constant 0 : i32
    %c0_i32_1 = arith.constant 0 : i32
    return %c0_i32, %c0_i32_0 : i32, i32
  }
  func.func @transform_4(%arg0: i32) -> (i32, i32) {
    %c0_i32 = arith.constant 0 : i32
    %c0_i32_0 = arith.constant 0 : i32
    %c0_i32_1 = arith.constant 0 : i32
    return %c0_i32, %c0_i32_0 : i32, i32
  }
  func.func @transform_5(%arg0: i32) -> (i32, i32) {
    %c0_i32 = arith.constant 0 : i32
    %c0_i32_0 = arith.constant 0 : i32
    %c0_i32_1 = arith.constant 0 : i32
    return %c0_i32, %c0_i32_0 : i32, i32
  }
  func.func @transform_6(%arg0: i32) -> (i32, i32) {
    %c0_i32 = arith.constant 0 : i32
    %c0_i32_0 = arith.constant 0 : i32
    %c0_i32_1 = arith.constant 0 : i32
    return %c0_i32, %c0_i32_0 : i32, i32
  }
  func.func @transform_7(%arg0: i32) -> (i32, i32) {
    %c0_i32 = arith.constant 0 : i32
    %c0_i32_0 = arith.constant 0 : i32
    %c0_i32_1 = arith.constant 0 : i32
    return %c0_i32, %c0_i32_0 : i32, i32
  }
  func.func @transform_8(%arg0: i32) -> (i32, i32) {
    %c0_i32 = arith.constant 0 : i32
    %c0_i32_0 = arith.constant 0 : i32
    %c0_i32_1 = arith.constant 0 : i32
    return %c0_i32, %c0_i32_0 : i32, i32
  }
  func.func @transform_9(%arg0: i32) -> (i32, i32) {
    %c0_i32 = arith.constant 0 : i32
    %c0_i32_0 = arith.constant 0 : i32
    return %arg0, %c0_i32 : i32, i32
  }
}

</mosaic_0001>

<bundles_post_ra>
// kernel: tpu_custom_call.1
= control target key start
LH: loop header
LB: loop body
LE: loop exit
PB: predicated region body
PF: predicated region fallthrough
CT: control target
= control target key end

     0   :  { %14 = vsyncpa [#allocation3], 0  ;;  %s8718_s0 = inlined_call_operand.hbm [shape: f32[16,32], index: 0, kind: input, shape index: {}]   ;;  %s8719_s1 = inlined_call_operand.hbm [shape: f32[16,16], index: 1, kind: input, shape index: {}]   ;;  %s8720_s2 = inlined_call_operand.vmem [shape: f32[32,96], index: 2, kind: input, shape index: {}]   ;;  %s8721_s3 = inlined_call_operand.vmem [shape: f32[1,96], index: 3, kind: input, shape index: {}]   ;;  %s8722_s4 = inlined_call_operand.vmem [shape: f32[32,32], index: 4, kind: input, shape index: {}]   ;;  %s8723_s5 = inlined_call_operand.vmem [shape: f32[32,64], index: 5, kind: input, shape index: {}]   ;;  %s8724_s6 = inlined_call_operand.vmem [shape: f32[1,64], index: 6, kind: input, shape index: {}]   ;;  %s8725_s7 = inlined_call_operand.vmem [shape: f32[64,32], index: 7, kind: input, shape index: {}]   ;;  %s8726_s8 = inlined_call_operand.vmem [shape: f32[1,32], index: 8, kind: input, shape index: {}]   ;;  %s8727_s9 = inlined_call_operand.hbm [shape: f32[16,32], index: 9, kind: output, shape index: {}]  }
   0x1   :  { %15 = vsyncpa [#allocation6], 0 }
   0x2   :  { %16 = vsyncpa [#allocation4], 0  ;;  %s7781_s30 = smov [#allocation2]  }
   0x3   :  { %s22_s10 = sshll.u32 %s7781_s30, 4  ;;  %s23_s10 = int_to_ptr.vmem [resolvable:$true] %s22_s10 }
   0x4   :  { %s7723_s11 = scalar_lea.vmem %s23_s10, 256  ;;  %p7728_p1 = scmp.lt.s32.totalorder %s23_s10, %s23_s10 }
   0x5   :  { %p7724_p0 = scmp.ne.s32.totalorder %s23_s10, %s7723_s11  ;;  %p7729_p2 = scmp.lt.s32.totalorder %s7723_s11, %s7723_s11 }
   0x7   :  { %p7730_p3 = por %p7729_p2, %p7728_p1 }
   0x9   :  { %p7731_p4 = pnand %p7730_p3, %p7724_p0 }
   0xb   :  { %7734 = shalt.err (!%p7731_p4)
}
   0xc   :  { %s7782_s12 = smov 128   ;;  %s7783_s13 = smov 8  }
   0xd   :  { %28 = dma.hbm_to_vmem [thread:$0]  %s8718_s0, 256, %s23_s10, [#allocation3], %s7782_s12, %s7782_s12, %s7783_s13  }
   0xe   :  { %s7784_s16 = smov [#allocation5]  }
   0xf   :  { %s34_s17 = sshll.u32 %s7784_s16, 4  ;;  %s35_s17 = int_to_ptr.vmem [resolvable:$true] %s34_s17 }
  0x10   :  { %s7743_s18 = scalar_lea.vmem %s35_s17, 256  ;;  %p7748_p6 = scmp.lt.s32.totalorder %s35_s17, %s35_s17 }
  0x11   :  { %p7744_p5 = scmp.ne.s32.totalorder %s35_s17, %s7743_s18  ;;  %p7749_p7 = scmp.lt.s32.totalorder %s7743_s18, %s7743_s18 }
  0x13   :  { %p7750_p8 = por %p7749_p7, %p7748_p6 }
  0x15   :  { %p7751_p9 = pnand %p7750_p8, %p7744_p5 }
  0x17   :  { %7754 = shalt.err (!%p7751_p9)
}
  0x18   :  { %40 = dma.hbm_to_vmem [thread:$0]  %s8719_s1, 256, %s35_s17, [#allocation6], %s7782_s12, %s7782_s12, %s7783_s13  }
  0x19   :  { %7775 = dma.done.wait [#allocation3], 256  }
  0x1a   :  { %7776 = vsyncadd [#allocation3], 4294967040 }
  0x1b   :  { %7777 = dma.done.wait [#allocation6], 256  }
  0x1c   :  { %7778 = vsyncadd [#allocation6], 4294967040  ;;  %vm65_vm0 = vcmask 261120   ;;  %v61_v0 = vld [vmem:[#allocation2] sm:$0xff]  ;;  %v62_v1 = vld [vmem:[#allocation2 + $0x8] sm:$0xff]  ;;  %vm644_vm1 = vcmask 64512  }
  0x1d   :  { %v66_v2 = vsel %vm65_vm0, %v61_v0, 0.0  ;;  %v69_v3 = vsel %vm65_vm0, %v62_v1, 0.0  ;;  %v96_v14 = vld [vmem:[%s8720_s2 + $0x18] sm:$0xff]  ;;  %v95_v16 = vld [vmem:[%s8720_s2 + $0x10] sm:$0xff]  ;;  %v94_v17 = vld [vmem:[%s8720_s2 + $0x8] sm:$0xff]  ;;  %vm1155_vm2 = vcmask 130048  }
  0x1e   :  { %67 = vadd.xlane.f32.xlu0 %v66_v2  ;;  %v7868_v15 = vand.u32 4294901760, %v96_v14  ;;  %v7876_v18 = vand.u32 4294901760, %v95_v16  ;;  %v7878_v19 = vand.u32 4294901760, %v94_v17  ;;  %v93_v26 = vld [vmem:[%s8720_s2] sm:$0xff]  ;;  %s7786_s28 = smov 64   ;;  %s7787_s29 = smov 88  }
  0x1f   :  { %v7907_v28 = vand.u32 4294901760, %v93_v26  ;;  %v6638_v61 = vld [vmem:[%s8721_s3] ss:$0 sm:$0xff]  ;;  %s7785_s3 = smov 96   ;;  %s7788_s30 = smov 120   ;;  %vm4882_vm3 = vcmask 195584  }
  0x20   :  { %v7881_v20 = vsub.f32 %v96_v14, %v7868_v15  ;;  %7001 = vmatprep.subr.mxu0 %v7868_v15  ;;  %v7885_v21 = vsub.f32 %v95_v16, %v7876_v18  ;;  %v7888_v22 = vsub.f32 %v94_v17, %v7878_v19  ;;  %s7789_s10 = smov 56   ;;  %s7790_s11 = smov 80   ;;  %vm6029_vm4 = vcmask 523264  }
  0x21   :  { %7002 = vmatpush3.msra.mxu0 %v7868_v15  ;;  %v7916_v32 = vsub.f32 %v93_v26, %v7907_v28  ;;  %s7791_s14 = smov 112   ;;  %s7792_s15 = smov 48  }
  0x22   :  { %70 = vadd.xlane.f32.xlu0 %v69_v3  ;;  %v7892_v23 = vand.u32 4294901760, %v7881_v20  ;;  %7003 = vmatprep.subr.mxu0 %v7876_v18  ;;  %v7896_v24 = vand.u32 4294901760, %v7885_v21  ;;  %v7899_v25 = vand.u32 4294901760, %v7888_v22  ;;  %s7793_s16 = smov 72   ;;  %s7794_s17 = smov 104  }
  0x23   :  { %7004 = vmatpush3.msra.mxu0 %v7876_v18  ;;  %v7921_v35 = vand.u32 4294901760, %v7916_v32  ;;  %s7795_s18 = smov 40   ;;  %s7796_s19 = smov 16  }
  0x24   :  { %v227_v27 = vsub.f32 %v7881_v20, %v7892_v23  ;;  %7005 = vmatprep.subr.mxu0 %v7878_v19  ;;  %v234_v29 = vsub.f32 %v7885_v21, %v7896_v24  ;;  %v241_v30 = vsub.f32 %v7888_v22, %v7899_v25 }
  0x25   :  { %7006 = vmatpush3.msra.mxu0 %v7878_v19  ;;  %v248_v36 = vsub.f32 %v7916_v32, %v7921_v35 }
  0x26   :  { %v228_v31 = vand.u32 4294901760, %v227_v27  ;;  %7007 = vmatprep.subr.mxu0 %v7907_v28  ;;  %v235_v33 = vand.u32 4294901760, %v234_v29  ;;  %v242_v34 = vand.u32 4294901760, %v241_v30 }
  0x27   :  { %7008 = vmatpush3.msra.mxu0 %v7907_v28  ;;  %v249_v37 = vand.u32 4294901760, %v248_v36 }
  0x28   :  { %7012 = vmatprep.subr.mxu1 %v228_v31  ;;  %7023 = vmatprep.subr.mxu0 %v7881_v20 }
  0x29   :  { %7013 = vmatpush3.msra.mxu1 %v228_v31 }
  0x2a   :  { %7014 = vmatprep.subr.mxu1 %v235_v33 }
  0x2b   :  { %7015 = vmatpush3.msra.mxu1 %v235_v33 }
  0x2c   :  { %7016 = vmatprep.subr.mxu1 %v242_v34 }
  0x2d   :  { %7017 = vmatpush3.msra.mxu1 %v242_v34 }
  0x2e   :  { %7018 = vmatprep.subr.mxu1 %v249_v37 }
  0x2f   :  { %7019 = vmatpush3.msra.mxu1 %v249_v37 }
  0x30   :  { %7034 = vmatprep.subr.mxu1 %v7868_v15 }
  0xa7   :  { %v68_v4 = vpop.xlane.xlu0 %67 }
  0xa8   :  { %v73_v5 = vmul.f32 0.03125, %v68_v4 }
  0xaa   :  { %v75_v6 = vsub.f32 %v61_v0, %v73_v5 }
  0xab   :  { %v71_v7 = vpop.xlane.xlu0 %70 }
  0xac   :  { %v74_v8 = vmul.f32 0.03125, %v71_v7  ;;  %v77_v9 = vmul.f32 %v75_v6, %v75_v6 }
  0xae   :  { %v76_v10 = vsub.f32 %v62_v1, %v74_v8  ;;  %v79_v11 = vsel %vm65_vm0, %v77_v9, 0.0 }
  0xaf   :  { %80 = vadd.xlane.f32.xlu1 %v79_v11 }
  0xb0   :  { %v78_v12 = vmul.f32 %v76_v10, %v76_v10 }
  0xb2   :  { %v82_v13 = vsel %vm65_vm0, %v78_v12, 0.0 }
  0xb3   :  { %83 = vadd.xlane.f32.xlu1 %v82_v13 }
 0x138   :  { %v81_v38 = vpop.xlane.xlu1 %80 }
 0x139   :  { %v85_v39 = vmul.f32 0.03125, %v81_v38 }
 0x13b   :  { %v87_v40 = vadd.f32 1e-05, %v85_v39 }
 0x13c   :  { %v84_v41 = vpop.xlane.xlu1 %83 }
 0x13d   :  { %7667 = vrsqrt.f32 %v87_v40  ;;  %v86_v42 = vmul.f32 0.03125, %v84_v41 }
 0x13f   :  { %v88_v43 = vadd.f32 1e-05, %v86_v42 }
 0x141   :  { %7669 = vrsqrt.f32 %v88_v43 }
 0x14a   :  { %v7668_v44 = vpop.eup %7667 }
 0x14b   :  { %v91_v45 = vmul.f32 %v7668_v44, %v75_v6 }
 0x14d   :  { %v105_v46 = vsel %vm65_vm0, %v91_v45, 0 }
 0x14e   :  { %v7670_v47 = vpop.eup %7669  ;;  %v179_v48 = vand.u32 4294901760, %v105_v46 }
 0x14f   :  { %v92_v49 = vmul.f32 %v7670_v47, %v76_v10 }
 0x150   :  { %7020 = vmatprep.mubr.f32.mxu1 %v179_v48  ;;  %v180_v50 = vsub.f32 %v105_v46, %v179_v48 }
 0x151   :  { %v108_v51 = vsel %vm65_vm0, %v92_v49, 0 }
 0x152   :  { %v189_v52 = vand.u32 4294901760, %v108_v51  ;;  %v181_v53 = vand.u32 4294901760, %v180_v50 }
 0x154   :  { %v190_v54 = vsub.f32 %v108_v51, %v189_v52  ;;  %7021 = vmatmul.mubr.f32.vlgmr.msra.gmra.mxu1 %v189_v52  ;;  %v182_v55 = vsub.f32 %v180_v50, %v181_v53  ;;  %v7976_v51 = vld [vmem:[#allocation5] sm:$0xff] }
 0x155   :  { %7035 = vmatpush3.msra.mxu1 %v7868_v15  ;;  %7042 = vmatprep.mubr.f32.mxu1 %v181_v53 }
 0x156   :  { %7036 = vmatprep.subr.mxu1 %v7876_v18  ;;  %v183_v56 = vand.u32 4294901760, %v182_v55  ;;  %v191_v57 = vand.u32 4294901760, %v190_v54 }
 0x157   :  { %7037 = vmatpush3.msra.mxu1 %v7876_v18 }
 0x158   :  { %7038 = vmatprep.subr.mxu1 %v7878_v19  ;;  %7009 = vmatprep.mubr.f32.mxu0 %v183_v56  ;;  %v192_v58 = vsub.f32 %v190_v54, %v191_v57 }
 0x159   :  { %7039 = vmatpush3.msra.mxu1 %v7878_v19 }
 0x15a   :  { %7040 = vmatprep.subr.mxu1 %v7907_v28  ;;  %v193_v59 = vand.u32 4294901760, %v192_v58 }
 0x15b   :  { %7041 = vmatpush3.msra.mxu1 %v7907_v28 }
 0x15c   :  { %7043 = vmatmul.mubr.f32.vlgmr.msra.gmra.mxu1 %v191_v57  ;;  %7056 = vmatprep.subr.mxu1 %v7868_v15 }
 0x15d   :  { %7010 = vmatmul.mubr.f32.vlgmr.msra.gmra.mxu0 %v193_v59  ;;  %7057 = vmatpush3.msra.mxu1 %v7868_v15 }
 0x15e   :  { %7024 = vmatpush3.msra.mxu0 %v7881_v20  ;;  %7064 = vmatprep.mubr.f32.mxu1 %v179_v48 }
 0x15f   :  { %7025 = vmatprep.subr.mxu0 %v7885_v21  ;;  %7031 = vmatprep.mubr.f32.mxu0 %v180_v50 }
 0x160   :  { %7058 = vmatprep.subr.mxu1 %v7876_v18  ;;  %7026 = vmatpush3.msra.mxu0 %v7885_v21 }
 0x161   :  { %7059 = vmatpush3.msra.mxu1 %v7876_v18  ;;  %7027 = vmatprep.subr.mxu0 %v7888_v22 }
 0x162   :  { %7060 = vmatprep.subr.mxu1 %v7878_v19  ;;  %7028 = vmatpush3.msra.mxu0 %v7888_v22 }
 0x163   :  { %7061 = vmatpush3.msra.mxu1 %v7878_v19  ;;  %7029 = vmatprep.subr.mxu0 %v7916_v32 }
 0x164   :  { %7062 = vmatprep.subr.mxu1 %v7907_v28  ;;  %7030 = vmatpush3.msra.mxu0 %v7916_v32 }
 0x165   :  { %7063 = vmatpush3.msra.mxu1 %v7907_v28  ;;  %7032 = vmatmul.mubr.f32.vlgmr.msra.gmra.mxu0 %v190_v54 }
 0x166   :  { %7045 = vmatprep.subr.mxu0 %v7892_v23  ;;  %7065 = vmatmul.mubr.f32.vlgmr.msra.gmra.mxu1 %v189_v52 }
 0x167   :  { %7046 = vmatpush3.msra.mxu0 %v7892_v23  ;;  %7053 = vmatprep.mubr.f32.mxu0 %v179_v48  ;;  %v7974_v48 = vld [vmem:[#allocation5 + $0x8] sm:$0xff] }
 0x168   :  { %7047 = vmatprep.subr.mxu0 %v7896_v24 }
 0x169   :  { %7048 = vmatpush3.msra.mxu0 %v7896_v24 }
 0x16a   :  { %7049 = vmatprep.subr.mxu0 %v7899_v25 }
 0x16b   :  { %7050 = vmatpush3.msra.mxu0 %v7899_v25 }
 0x16c   :  { %7051 = vmatprep.subr.mxu0 %v7921_v35 }
 0x16d   :  { %7052 = vmatpush3.msra.mxu0 %v7921_v35 }
 0x16e   :  { %7054 = vmatmul.mubr.f32.vlgmr.msra.gmra.mxu0 %v189_v52 }
 0x214   :  { %v7022_v62 = vpop.f32.mrf.mxu1 }
 0x216   :  { %v286_v3 = vpop.f32.mrf.mxu1 }
 0x21c   :  { %v7044_v5 = vpop.f32.mrf.mxu1 }
 0x21d   :  { %v7011_v60 = vpop.f32.mrf.mxu0 }
 0x21e   :  { %v196_v0 = vadd.f32 %v7011_v60, %v6638_v61  ;;  %v456_v10 = vpop.f32.mrf.mxu1 }
 0x21f   :  { %v185_v63 = vpop.f32.mrf.mxu0 }
 0x220   :  { %v186_v1 = vadd.f32 %v6638_v61, %v185_v63  ;;  %v293_v4 = vadd.f32 %v7022_v62, %v196_v0 }
 0x222   :  { %v287_v8 = vadd.f32 %v286_v3, %v186_v1 }
 0x225   :  { %v7033_v2 = vpop.f32.mrf.mxu0 }
 0x226   :  { %v380_v7 = vadd.f32 %v7033_v2, %v293_v4  ;;  %v7066_v12 = vpop.f32.mrf.mxu1 }
 0x227   :  { %v372_v6 = vpop.f32.mrf.mxu0 }
 0x228   :  { %v373_v9 = vadd.f32 %v372_v6, %v287_v8  ;;  %v465_v11 = vadd.f32 %v7044_v5, %v380_v7  ;;  %v628_v19 = vpop.f32.mrf.mxu1 }
 0x22a   :  { %v457_v15 = vadd.f32 %v456_v10, %v373_v9 }
 0x22e   :  { %v7055_v13 = vpop.f32.mrf.mxu0 }
 0x22f   :  { %v554_v14 = vadd.f32 %v7055_v13, %v465_v11 }
 0x230   :  { %v547_v16 = vpop.f32.mrf.mxu0 }
 0x231   :  { %v7962_v17 = vadd.f32 %v7066_v12, %v554_v14  ;;  %v548_v18 = vadd.f32 %v547_v16, %v457_v15 }
 0x233   :  { %v7964_v20 = vadd.f32 %v628_v19, %v548_v18  ;;  %642 = vrot.lane.b32.xlu0 %v7962_v17, %s7785_s3  ;;  %v647_v27 = vsel %vm644_vm1, %v7962_v17, 0 }
 0x234   :  { %v730_v28 = vand.u32 4294901760, %v647_v27 }
 0x235   :  { %640 = vrot.lane.b32.xlu1 %v7964_v20, %s7785_s3  ;;  %v645_v21 = vsel %vm644_vm1, %v7964_v20, 0 }
 0x236   :  { %v720_v22 = vand.u32 4294901760, %v645_v21  ;;  %v731_v29 = vsub.f32 %v647_v27, %v730_v28 }
 0x238   :  { %7078 = vmatprep.mubr.f32.mxu1 %v720_v22  ;;  %v721_v23 = vsub.f32 %v645_v21, %v720_v22  ;;  %v732_v34 = vand.u32 4294901760, %v731_v29 }
 0x23a   :  { %v722_v24 = vand.u32 4294901760, %v721_v23  ;;  %v733_v39 = vsub.f32 %v731_v29, %v732_v34 }
 0x23c   :  { %v723_v25 = vsub.f32 %v721_v23, %v722_v24  ;;  %v734_v43 = vand.u32 4294901760, %v733_v39 }
 0x23e   :  { %v724_v26 = vand.u32 4294901760, %v723_v25 }
 0x240   :  { %7071 = vmatprep.mubr.f32.mxu0 %v724_v26 }
 0x2a5   :  { %v643_v30 = vpop.permute.xlu0 %642 }
 0x2a6   :  { %v651_v31 = vsel %vm644_vm1, %v643_v30, 0 }
 0x2a7   :  { %v682_v32 = vand.u32 4294901760, %v651_v31  ;;  %v641_v33 = vpop.permute.xlu1 %640 }
 0x2a8   :  { %v649_v35 = vsel %vm644_vm1, %v641_v33, 0 }
 0x2a9   :  { %v770_v36 = vsub.f32 %v651_v31, %v682_v32  ;;  %v685_v37 = vand.u32 4294901760, %v649_v35  ;;  %7067 = vmatprep.subr.mxu0 %v682_v32 }
 0x2aa   :  { %7068 = vmatpush3.xpose.msra.mxu0 %v682_v32 }
 0x2ab   :  { %v777_v38 = vsub.f32 %v649_v35, %v685_v37  ;;  %7069 = vmatprep.subr.mxu0 %v685_v37  ;;  %v771_v40 = vand.u32 4294901760, %v770_v36 }
 0x2ad   :  { %v772_v41 = vsub.f32 %v770_v36, %v771_v40  ;;  %v778_v42 = vand.u32 4294901760, %v777_v38 }
 0x2ae   :  { %7070 = vmatpush3.xpose.msra.mxu0 %v685_v37 }
 0x2af   :  { %7081 = vmatprep.subr.mxu0 %v770_v36  ;;  %v773_v44 = vand.u32 4294901760, %v772_v41  ;;  %v779_v45 = vsub.f32 %v777_v38, %v778_v42 }
 0x2b1   :  { %7072 = vmatmul.mubr.f32.vlgmr.msra.gmra.mxu0 %v734_v43  ;;  %7074 = vmatprep.subr.mxu1 %v773_v44  ;;  %v780_v46 = vand.u32 4294901760, %v779_v45 }
 0x2b2   :  { %7075 = vmatpush3.xpose.msra.mxu1 %v773_v44  ;;  %7082 = vmatpush3.xpose.msra.mxu0 %v770_v36 }
 0x2b3   :  { %7085 = vmatprep.mubr.f32.mxu0 %v721_v23  ;;  %7076 = vmatprep.subr.mxu1 %v780_v46 }
 0x2b4   :  { %7083 = vmatprep.subr.mxu0 %v777_v38 }
 0x2b6   :  { %7077 = vmatpush3.xpose.msra.mxu1 %v780_v46  ;;  %7084 = vmatpush3.xpose.msra.mxu0 %v777_v38 }
 0x2b7   :  { %7088 = vmatprep.subr.mxu1 %v682_v32  ;;  %7095 = vmatprep.subr.mxu0 %v771_v40 }
 0x2b9   :  { %7079 = vmatmul.mubr.f32.vlgmr.msra.gmra.mxu1 %v730_v28  ;;  %7086 = vmatmul.mubr.f32.vlgmr.msra.gmra.mxu0 %v731_v29 }
 0x2ba   :  { %7089 = vmatpush3.xpose.msra.mxu1 %v682_v32  ;;  %7092 = vmatprep.mubr.f32.mxu1 %v722_v24 }
 0x2bb   :  { %7096 = vmatpush3.xpose.msra.mxu0 %v771_v40  ;;  %7099 = vmatprep.mubr.f32.mxu0 %v720_v22 }
 0x2bc   :  { %7090 = vmatprep.subr.mxu1 %v685_v37  ;;  %7097 = vmatprep.subr.mxu0 %v778_v42 }
 0x2be   :  { %7091 = vmatpush3.xpose.msra.mxu1 %v685_v37 }
 0x2bf   :  { %7098 = vmatpush3.xpose.msra.mxu0 %v778_v42  ;;  %7102 = vmatprep.subr.mxu1 %v682_v32 }
 0x2c1   :  { %7093 = vmatmul.mubr.f32.vlgmr.msra.gmra.mxu1 %v732_v34 }
 0x2c2   :  { %7100 = vmatmul.mubr.f32.vlgmr.msra.gmra.mxu0 %v730_v28  ;;  %7103 = vmatpush3.xpose.msra.mxu1 %v682_v32 }
 0x2c3   :  { %7106 = vmatprep.mubr.f32.mxu1 %v720_v22  ;;  %7104 = vmatprep.subr.mxu1 %v685_v37 }
 0x2c6   :  { %7105 = vmatpush3.xpose.msra.mxu1 %v685_v37 }
 0x2c9   :  { %7107 = vmatmul.mubr.f32.vlgmr.msra.gmra.mxu1 %v730_v28 }
 0x371   :  { %v7073_v47 = vpop.f32.mrf.mxu0 }
 0x372   :  { %v737_v52 = vadd.f32 %v7073_v47, %v7974_v48 }
 0x373   :  { %v726_v50 = vpop.f32.mrf.mxu0 }
 0x374   :  { %v727_v54 = vadd.f32 %v726_v50, %v7976_v51 }
 0x379   :  { %v7080_v49 = vpop.f32.mrf.mxu1  ;;  %v7087_v56 = vpop.f32.mrf.mxu0 }
 0x37a   :  { %v824_v55 = vadd.f32 %v7080_v49, %v737_v52 }
 0x37b   :  { %v817_v53 = vpop.f32.mrf.mxu1  ;;  %v899_v60 = vpop.f32.mrf.mxu0 }
 0x37c   :  { %v818_v57 = vadd.f32 %v817_v53, %v727_v54  ;;  %v907_v59 = vadd.f32 %v7087_v56, %v824_v55 }
 0x37e   :  { %v900_v62 = vadd.f32 %v899_v60, %v818_v57 }
 0x381   :  { %v7094_v58 = vpop.f32.mrf.mxu1 }
 0x382   :  { %v990_v63 = vadd.f32 %v7094_v58, %v907_v59  ;;  %v7101_v0 = vpop.f32.mrf.mxu0 }
 0x383   :  { %v981_v61 = vpop.f32.mrf.mxu1 }
 0x384   :  { %v982_v1 = vadd.f32 %v981_v61, %v900_v62  ;;  %v1073_v2 = vadd.f32 %v7101_v0, %v990_v63  ;;  %v1066_v3 = vpop.f32.mrf.mxu0 }
 0x386   :  { %v1067_v5 = vadd.f32 %v1066_v3, %v982_v1 }
 0x389   :  { %v7108_v4 = vpop.f32.mrf.mxu1 }
 0x38a   :  { %v1152_v6 = vadd.f32 %v7108_v4, %v1073_v2 }
 0x38b   :  { %v1145_v7 = vpop.f32.mrf.mxu1 }
 0x38c   :  { %v1146_v8 = vadd.f32 %v1145_v7, %v1067_v5  ;;  %v1159_v9 = vsel %vm1155_vm2, %v1152_v6, -inf }
 0x38d   :  { %1160 = vmax.xlane.f32.xlu0 %v1159_v9 }
 0x38e   :  { %v1156_v10 = vsel %vm1155_vm2, %v1146_v8, -inf }
 0x38f   :  { %1157 = vmax.xlane.f32.xlu1 %v1156_v10 }
 0x416   :  { %v1161_v11 = vpop.xlane.xlu0 %1160 }
 0x417   :  { %v1163_v12 = vsub.f32 %v1152_v6, %v1161_v11 }
 0x418   :  { %v1158_v13 = vpop.xlane.xlu1 %1157 }
 0x419   :  { %v1166_v14 = vmul.f32 1.442695, %v1163_v12  ;;  %v1162_v15 = vsub.f32 %v1146_v8, %v1158_v13 }
 0x41b   :  { %7671 = vpow2.f32 %v1166_v14  ;;  %v1164_v16 = vmul.f32 1.442695, %v1162_v15 }
 0x41d   :  { %7673 = vpow2.f32 %v1164_v16 }
 0x428   :  { %v7672_v18 = vpop.eup %7671 }
 0x429   :  { %v1171_v19 = vsel %vm1155_vm2, %v7672_v18, 0.0 }
 0x42a   :  { %v7674_v21 = vpop.eup %7673  ;;  %1172 = vadd.xlane.f32.xlu1 %v1171_v19 }
 0x42b   :  { %v1168_v22 = vsel %vm1155_vm2, %v7674_v21, 0.0 }
 0x42c   :  { %1169 = vadd.xlane.f32.xlu0 %v1168_v22 }
 0x43b   :  { %1178 = vrot.lane.b32.xlu1 %v7964_v20, %s7786_s28 }
 0x43f   :  { %1698 = vrot.lane.b32.xlu1 %v7962_v17, %s7787_s29 }
 0x442   :  { %1180 = vrot.lane.b32.xlu0 %v7962_v17, %s7786_s28 }
 0x443   :  { %1696 = vrot.lane.b32.xlu1 %v7964_v20, %s7787_s29 }
 0x446   :  { %1692 = vrot.lane.b32.xlu0 %v7964_v20, %s7788_s30 }
 0x447   :  { %1694 = vrot.lane.b32.xlu1 %v7962_v17, %s7788_s30 }
 0x4b3   :  { %v1173_v23 = vpop.xlane.xlu1 %1172 }
 0x4b4   :  { %7675 = vrcp.f32 %v1173_v23 }
 0x4b5   :  { %v1170_v24 = vpop.xlane.xlu0 %1169 }
 0x4b6   :  { %7677 = vrcp.f32 %v1170_v24 }
 0x4b7   :  { %v1179_v25 = vpop.permute.xlu1 %1178 }
 0x4b8   :  { %v7990_v26 = vand.u32 4294901760, %v1179_v25 }
 0x4b9   :  { %v1181_v27 = vpop.permute.xlu0 %1180 }
 0x4ba   :  { %v7993_v28 = vsub.f32 %v1179_v25, %v7990_v26  ;;  %v1219_v29 = vand.u32 4294901760, %v1181_v27 }
 0x4bb   :  { %v1699_v30 = vpop.permute.xlu1 %1698 }
 0x4bc   :  { %v7995_v31 = vsub.f32 %v1181_v27, %v1219_v29  ;;  %7109 = vmatprep.subr.mxu0 %v1219_v29  ;;  %v7998_v32 = vand.u32 4294901760, %v7993_v28  ;;  %v1706_v33 = vsel %vm644_vm1, %v1699_v30, 0 }
 0x4bd   :  { %7110 = vmatpush3.msra.mxu0 %v1219_v29  ;;  %v8006_v36 = vand.u32 4294901760, %v1706_v33  ;;  %v1693_v52 = vpop.permute.xlu0 %1692 }
 0x4be   :  { %7111 = vmatprep.subr.mxu0 %v7990_v26  ;;  %v8003_v34 = vand.u32 4294901760, %v7995_v31  ;;  %v1316_v39 = vsub.f32 %v7993_v28, %v7998_v32  ;;  %v1700_v58 = vsel %vm644_vm1, %v1693_v52, 0 }
 0x4bf   :  { %7112 = vmatpush3.msra.mxu0 %v7990_v26  ;;  %v1697_v35 = vpop.permute.xlu1 %1696  ;;  %v8017_v45 = vsub.f32 %v1706_v33, %v8006_v36  ;;  %v8035_v63 = vand.u32 4294901760, %v1700_v58 }
 0x4c0   :  { %v1704_v37 = vsel %vm644_vm1, %v1697_v35, 0  ;;  %7123 = vmatprep.subr.mxu0 %v7995_v31  ;;  %v1309_v38 = vsub.f32 %v7995_v31, %v8003_v34  ;;  %v1317_v46 = vand.u32 4294901760, %v1316_v39 }
 0x4c1   :  { %v7676_v40 = vpop.eup %7675  ;;  %v8014_v44 = vand.u32 4294901760, %v1704_v37  ;;  %v8028_v57 = vand.u32 4294901760, %v8017_v45  ;;  %v1776_v7 = vsub.f32 %v1700_v58, %v8035_v63 }
 0x4c2   :  { %v1310_v41 = vand.u32 4294901760, %v1309_v38  ;;  %v1177_v42 = vmul.f32 %v7676_v40, %v7672_v18 }
 0x4c3   :  { %v7678_v43 = vpop.eup %7677  ;;  %v8024_v54 = vsub.f32 %v1704_v37, %v8014_v44  ;;  %v1695_v0 = vpop.permute.xlu1 %1694  ;;  %v1827_v1 = vsub.f32 %v8017_v45, %v8028_v57  ;;  %v1777_v12 = vand.u32 4294901760, %v1776_v7 }
 0x4c4   :  { %7116 = vmatprep.subr.mxu1 %v1310_v41  ;;  %v1175_v47 = vmul.f32 %v7678_v43, %v7674_v21  ;;  %v1188_v49 = vsel %vm1155_vm2, %v1177_v42, 0  ;;  %v1702_v4 = vsel %vm644_vm1, %v1695_v0, 0 }
 0x4c5   :  { %7117 = vmatpush3.msra.mxu1 %v1310_v41  ;;  %v8020_v50 = vand.u32 4294901760, %v1188_v49  ;;  %v8033_v62 = vand.u32 4294901760, %v8024_v54  ;;  %v1828_v8 = vand.u32 4294901760, %v1827_v1  ;;  %v1785_v10 = vand.u32 4294901760, %v1702_v4 }
 0x4c6   :  { %7118 = vmatprep.subr.mxu1 %v1317_v46  ;;  %v1185_v53 = vsel %vm1155_vm2, %v1175_v47, 0  ;;  %v1778_v14 = vsub.f32 %v1776_v7, %v1777_v12 }
 0x4c7   :  { %7119 = vmatpush3.msra.mxu1 %v1317_v46  ;;  %v1257_v55 = vand.u32 4294901760, %v1185_v53  ;;  %v1268_v56 = vsub.f32 %v1188_v49, %v8020_v50  ;;  %v1834_v6 = vsub.f32 %v8024_v54, %v8033_v62  ;;  %v1786_v13 = vsub.f32 %v1702_v4, %v1785_v10 }
 0x4c8   :  { %7130 = vmatprep.subr.mxu1 %v1219_v29  ;;  %v1779_v16 = vand.u32 4294901760, %v1778_v14 }
 0x4c9   :  { %7120 = vmatprep.mubr.f32.mxu1 %v1257_v55  ;;  %v1258_v59 = vsub.f32 %v1185_v53, %v1257_v55  ;;  %v1269_v60 = vand.u32 4294901760, %v1268_v56  ;;  %v1835_v11 = vand.u32 4294901760, %v1834_v6  ;;  %v1787_v15 = vand.u32 4294901760, %v1786_v13 }
 0x4ca   :  { %7121 = vmatmul.mubr.f32.vlgmr.msra.gmra.mxu1 %v8020_v50 }
 0x4cb   :  { %7131 = vmatpush3.msra.mxu1 %v1219_v29  ;;  %v1259_v61 = vand.u32 4294901760, %v1258_v59  ;;  %v1270_v2 = vsub.f32 %v1268_v56, %v1269_v60  ;;  %v1788_v18 = vsub.f32 %v1786_v13, %v1787_v15 }
 0x4cc   :  { %7132 = vmatprep.subr.mxu1 %v7990_v26 }
 0x4cd   :  { %7133 = vmatpush3.msra.mxu1 %v7990_v26  ;;  %7134 = vmatprep.mubr.f32.mxu1 %v1259_v61  ;;  %v1260_v3 = vsub.f32 %v1258_v59, %v1259_v61  ;;  %v1271_v9 = vand.u32 4294901760, %v1270_v2  ;;  %v1789_v19 = vand.u32 4294901760, %v1788_v18 }
 0x4ce   :  { %7144 = vmatprep.subr.mxu1 %v1219_v29  ;;  %7135 = vmatmul.mubr.f32.vlgmr.msra.gmra.mxu1 %v1269_v60 }
 0x4cf   :  { %7145 = vmatpush3.msra.mxu1 %v1219_v29  ;;  %7148 = vmatprep.mubr.f32.mxu1 %v1257_v55  ;;  %v1261_v5 = vand.u32 4294901760, %v1260_v3 }
 0x4d0   :  { %7146 = vmatprep.subr.mxu1 %v7990_v26 }
 0x4d1   :  { %7147 = vmatpush3.msra.mxu1 %v7990_v26  ;;  %7113 = vmatprep.mubr.f32.mxu0 %v1261_v5 }
 0x4d2   :  { %7158 = vmatprep.subr.mxu1 %v1828_v8  ;;  %7114 = vmatmul.mubr.f32.vlgmr.msra.gmra.mxu0 %v1271_v9 }
 0x4d3   :  { %7124 = vmatpush3.msra.mxu0 %v7995_v31  ;;  %7149 = vmatmul.mubr.f32.vlgmr.msra.gmra.mxu1 %v8020_v50 }
 0x4d4   :  { %7159 = vmatpush3.xpose.msra.mxu1 %v1828_v8  ;;  %7125 = vmatprep.subr.mxu0 %v7993_v28 }
 0x4d5   :  { %7127 = vmatprep.mubr.f32.mxu0 %v1258_v59  ;;  %7160 = vmatprep.subr.mxu1 %v1835_v11 }
 0x4d6   :  { %7162 = vmatprep.mubr.f32.mxu1 %v8035_v63  ;;  %7126 = vmatpush3.msra.mxu0 %v7993_v28 }
 0x4d7   :  { %7137 = vmatprep.subr.mxu0 %v8003_v34  ;;  %7128 = vmatmul.mubr.f32.vlgmr.msra.gmra.mxu0 %v1268_v56 }
 0x4d8   :  { %7138 = vmatpush3.msra.mxu0 %v8003_v34  ;;  %7161 = vmatpush3.xpose.msra.mxu1 %v1835_v11 }
 0x4d9   :  { %7139 = vmatprep.subr.mxu0 %v7998_v32  ;;  %7141 = vmatprep.mubr.f32.mxu0 %v1257_v55 }
 0x4da   :  { %7172 = vmatprep.subr.mxu1 %v8006_v36  ;;  %7140 = vmatpush3.msra.mxu0 %v7998_v32 }
 0x4db   :  { %7151 = vmatprep.subr.mxu0 %v8006_v36  ;;  %7163 = vmatmul.mubr.f32.vlgmr.msra.gmra.mxu1 %v1785_v10 }
 0x4dc   :  { %7142 = vmatmul.mubr.f32.vlgmr.msra.gmra.mxu0 %v8020_v50  ;;  %7173 = vmatpush3.xpose.msra.mxu1 %v8006_v36 }
 0x4dd   :  { %7152 = vmatpush3.xpose.msra.mxu0 %v8006_v36  ;;  %7176 = vmatprep.mubr.f32.mxu1 %v1777_v12 }
 0x4de   :  { %7153 = vmatprep.subr.mxu0 %v8014_v44  ;;  %7155 = vmatprep.mubr.f32.mxu0 %v1779_v16 }
 0x4df   :  { %7174 = vmatprep.subr.mxu1 %v8014_v44 }
 0x4e0   :  { %7175 = vmatpush3.xpose.msra.mxu1 %v8014_v44 }
 0x4e1   :  { %7154 = vmatpush3.xpose.msra.mxu0 %v8014_v44  ;;  %7186 = vmatprep.subr.mxu1 %v8006_v36 }
 0x4e2   :  { %7165 = vmatprep.subr.mxu0 %v8017_v45 }
 0x4e3   :  { %7177 = vmatmul.mubr.f32.vlgmr.msra.gmra.mxu1 %v1787_v15 }
 0x4e4   :  { %7156 = vmatmul.mubr.f32.vlgmr.msra.gmra.mxu0 %v1789_v19  ;;  %7187 = vmatpush3.xpose.msra.mxu1 %v8006_v36 }
 0x4e5   :  { %7166 = vmatpush3.xpose.msra.mxu0 %v8017_v45  ;;  %7169 = vmatprep.mubr.f32.mxu0 %v1776_v7 }
 0x4e6   :  { %7190 = vmatprep.mubr.f32.mxu1 %v8035_v63  ;;  %7167 = vmatprep.subr.mxu0 %v8024_v54 }
 0x4e7   :  { %7188 = vmatprep.subr.mxu1 %v8014_v44 }
 0x4e8   :  { %7189 = vmatpush3.xpose.msra.mxu1 %v8014_v44 }
 0x4e9   :  { %7168 = vmatpush3.xpose.msra.mxu0 %v8024_v54 }
 0x4ea   :  { %7179 = vmatprep.subr.mxu0 %v8028_v57 }
 0x4eb   :  { %7191 = vmatmul.mubr.f32.vlgmr.msra.gmra.mxu1 %v1785_v10 }
 0x4ec   :  { %7170 = vmatmul.mubr.f32.vlgmr.msra.gmra.mxu0 %v1786_v13 }
 0x4ed   :  { %7180 = vmatpush3.xpose.msra.mxu0 %v8028_v57  ;;  %7183 = vmatprep.mubr.f32.mxu0 %v8035_v63 }
 0x4ee   :  { %7181 = vmatprep.subr.mxu0 %v8033_v62 }
 0x4f1   :  { %7182 = vmatpush3.xpose.msra.mxu0 %v8033_v62 }
 0x4f4   :  { %7184 = vmatmul.mubr.f32.vlgmr.msra.gmra.mxu0 %v1785_v10 }
 0x58a   :  { %v7122_v21 = vpop.f32.mrf.mxu1 }
 0x58c   :  { %v1354_v22 = vpop.f32.mrf.mxu1 }
 0x58e   :  { %v7136_v25 = vpop.f32.mrf.mxu1 }
 0x590   :  { %v1518_v29 = vpop.f32.mrf.mxu1 }
 0x592   :  { %v7115_v23 = vpop.f32.mrf.mxu0 }
 0x593   :  { %v1361_v24 = vadd.f32 %v7122_v21, %v7115_v23  ;;  %v7150_v34 = vpop.f32.mrf.mxu1 }
 0x594   :  { %v1263_v26 = vpop.f32.mrf.mxu0 }
 0x595   :  { %v1355_v27 = vadd.f32 %v1354_v22, %v1263_v26  ;;  %v1682_v41 = vpop.f32.mrf.mxu1 }
 0x597   :  { %v7129_v28 = vpop.f32.mrf.mxu0 }
 0x598   :  { %v1444_v30 = vadd.f32 %v7129_v28, %v1361_v24 }
 0x599   :  { %v1436_v31 = vpop.f32.mrf.mxu0 }
 0x59a   :  { %v1437_v32 = vadd.f32 %v1436_v31, %v1355_v27  ;;  %v1527_v33 = vadd.f32 %v7136_v25, %v1444_v30 }
 0x59b   :  { %v7164_v44 = vpop.f32.mrf.mxu1 }
 0x59c   :  { %v7143_v35 = vpop.f32.mrf.mxu0  ;;  %v1519_v36 = vadd.f32 %v1518_v29, %v1437_v32 }
 0x59d   :  { %v1610_v37 = vadd.f32 %v7143_v35, %v1527_v33  ;;  %v1872_v49 = vpop.f32.mrf.mxu1 }
 0x59e   :  { %v1603_v38 = vpop.f32.mrf.mxu0 }
 0x59f   :  { %v8079_v39 = vadd.f32 %v7150_v34, %v1610_v37  ;;  %v1604_v40 = vadd.f32 %v1603_v38, %v1519_v36 }
 0x5a1   :  { %v8081_v42 = vadd.f32 %v1682_v41, %v1604_v40 }
 0x5a3   :  { %v7178_v53 = vpop.f32.mrf.mxu1 }
 0x5a4   :  { %v7157_v43 = vpop.f32.mrf.mxu0 }
 0x5a5   :  { %v1792_v46 = vadd.f32 %v7157_v43, %v7974_v48  ;;  %v2036_v58 = vpop.f32.mrf.mxu1 }
 0x5a6   :  { %v1781_v45 = vpop.f32.mrf.mxu0 }
 0x5a7   :  { %v1782_v47 = vadd.f32 %v1781_v45, %v7976_v51  ;;  %v1879_v52 = vadd.f32 %v7164_v44, %v1792_v46 }
 0x5a9   :  { %v1873_v56 = vadd.f32 %v1872_v49, %v1782_v47 }
 0x5ab   :  { %v7192_v60 = vpop.f32.mrf.mxu1 }
 0x5ac   :  { %v7171_v50 = vpop.f32.mrf.mxu0 }
 0x5ad   :  { %v1962_v55 = vadd.f32 %v7171_v50, %v1879_v52  ;;  %v2200_v3 = vpop.f32.mrf.mxu1 }
 0x5ae   :  { %v1954_v54 = vpop.f32.mrf.mxu0 }
 0x5af   :  { %v1955_v57 = vadd.f32 %v1954_v54, %v1873_v56  ;;  %v2045_v59 = vadd.f32 %v7178_v53, %v1962_v55 }
 0x5b1   :  { %v2037_v63 = vadd.f32 %v2036_v58, %v1955_v57 }
 0x5b4   :  { %v7185_v61 = vpop.f32.mrf.mxu0 }
 0x5b5   :  { %v2128_v62 = vadd.f32 %v7185_v61, %v2045_v59 }
 0x5b6   :  { %v2121_v0 = vpop.f32.mrf.mxu0 }
 0x5b7   :  { %v2122_v1 = vadd.f32 %v2121_v0, %v2037_v63  ;;  %v2207_v2 = vadd.f32 %v7192_v60, %v2128_v62 }
 0x5b9   :  { %v2213_v4 = vsel %vm1155_vm2, %v2207_v2, -inf  ;;  %v2201_v5 = vadd.f32 %v2200_v3, %v2122_v1 }
 0x5ba   :  { %2214 = vmax.xlane.f32.xlu1 %v2213_v4 }
 0x5bb   :  { %v2210_v6 = vsel %vm1155_vm2, %v2201_v5, -inf }
 0x5bc   :  { %2211 = vmax.xlane.f32.xlu0 %v2210_v6 }
 0x5cb   :  { %2232 = vrot.lane.b32.xlu1 %v7964_v20, %s7789_s10 }
 0x5cf   :  { %2752 = vrot.lane.b32.xlu1 %v7962_v17, %s7790_s11 }
 0x5d3   :  { %2750 = vrot.lane.b32.xlu1 %v7964_v20, %s7790_s11 }
 0x5d7   :  { %2748 = vrot.lane.b32.xlu1 %v7962_v17, %s7791_s14 }
 0x643   :  { %v2215_v7 = vpop.xlane.xlu1 %2214 }
 0x644   :  { %v2217_v8 = vsub.f32 %v2207_v2, %v2215_v7 }
 0x645   :  { %v2212_v9 = vpop.xlane.xlu0 %2211 }
 0x646   :  { %v2220_v10 = vmul.f32 1.442695, %v2217_v8  ;;  %v2216_v11 = vsub.f32 %v2201_v5, %v2212_v9 }
 0x647   :  { %v2233_v18 = vpop.permute.xlu1 %2232 }
 0x648   :  { %7679 = vpow2.f32 %v2220_v10  ;;  %v2218_v12 = vmul.f32 1.442695, %v2216_v11  ;;  %v8095_v21 = vand.u32 4294901760, %v2233_v18 }
 0x64a   :  { %7681 = vpow2.f32 %v2218_v12  ;;  %v8098_v24 = vsub.f32 %v2233_v18, %v8095_v21 }
 0x64b   :  { %v2753_v23 = vpop.permute.xlu1 %2752 }
 0x64c   :  { %v2760_v27 = vsel %vm644_vm1, %v2753_v23, 0  ;;  %v8104_v29 = vand.u32 4294901760, %v8098_v24 }
 0x64d   :  { %v8110_v33 = vand.u32 4294901760, %v2760_v27 }
 0x64e   :  { %v2370_v36 = vsub.f32 %v8098_v24, %v8104_v29 }
 0x64f   :  { %v2751_v30 = vpop.permute.xlu1 %2750  ;;  %v8125_v45 = vsub.f32 %v2760_v27, %v8110_v33 }
 0x650   :  { %v2758_v34 = vsel %vm644_vm1, %v2751_v30, 0  ;;  %v2371_v46 = vand.u32 4294901760, %v2370_v36 }
 0x651   :  { %v8120_v43 = vand.u32 4294901760, %v2758_v34  ;;  %v8133_v56 = vand.u32 4294901760, %v8125_v45 }
 0x653   :  { %v8130_v53 = vsub.f32 %v2758_v34, %v8120_v43  ;;  %v2749_v61 = vpop.permute.xlu1 %2748  ;;  %v2881_v63 = vsub.f32 %v8125_v45, %v8133_v56 }
 0x654   :  { %v2756_v2 = vsel %vm644_vm1, %v2749_v61, 0 }
 0x655   :  { %v7680_v13 = vpop.eup %7679  ;;  %v8138_v60 = vand.u32 4294901760, %v8130_v53  ;;  %v2882_v6 = vand.u32 4294901760, %v2881_v63  ;;  %v2839_v8 = vand.u32 4294901760, %v2756_v2 }
 0x656   :  { %v2225_v14 = vsel %vm1155_vm2, %v7680_v13, 0.0 }
 0x657   :  { %v7682_v15 = vpop.eup %7681  ;;  %2226 = vadd.xlane.f32.xlu0 %v2225_v14  ;;  %v2888_v4 = vsub.f32 %v8130_v53, %v8138_v60  ;;  %v2840_v11 = vsub.f32 %v2756_v2, %v2839_v8 }
 0x658   :  { %v2222_v16 = vsel %vm1155_vm2, %v7682_v15, 0.0 }
 0x659   :  { %v2889_v9 = vand.u32 4294901760, %v2888_v4 }
 0x65b   :  { %2223 = vadd.xlane.f32.xlu0 %v2222_v16 }
 0x671   :  { %2234 = vrot.lane.b32.xlu0 %v7962_v17, %s7789_s10 }
 0x675   :  { %2746 = vrot.lane.b32.xlu0 %v7964_v20, %s7791_s14 }
 0x6e0   :  { %v2227_v19 = vpop.xlane.xlu0 %2226 }
 0x6e1   :  { %7683 = vrcp.f32 %v2227_v19 }
 0x6e4   :  { %v2224_v22 = vpop.xlane.xlu0 %2223 }
 0x6e5   :  { %7685 = vrcp.f32 %v2224_v22 }
 0x6e8   :  { %v2235_v25 = vpop.permute.xlu0 %2234 }
 0x6e9   :  { %v2273_v26 = vand.u32 4294901760, %v2235_v25 }
 0x6eb   :  { %v8101_v28 = vsub.f32 %v2235_v25, %v2273_v26  ;;  %7193 = vmatprep.subr.mxu0 %v2273_v26 }
 0x6ec   :  { %7194 = vmatpush3.msra.mxu0 %v2273_v26  ;;  %v2747_v50 = vpop.permute.xlu0 %2746 }
 0x6ed   :  { %7195 = vmatprep.subr.mxu0 %v8095_v21  ;;  %v8108_v31 = vand.u32 4294901760, %v8101_v28  ;;  %v2754_v57 = vsel %vm644_vm1, %v2747_v50, 0 }
 0x6ee   :  { %v7684_v32 = vpop.eup %7683  ;;  %7196 = vmatpush3.msra.mxu0 %v8095_v21  ;;  %v8140_v62 = vand.u32 4294901760, %v2754_v57 }
 0x6ef   :  { %7207 = vmatprep.subr.mxu0 %v8101_v28  ;;  %v2363_v35 = vsub.f32 %v8101_v28, %v8108_v31  ;;  %v2231_v37 = vmul.f32 %v7684_v32, %v7680_v13  ;;  %v2841_v13 = vand.u32 4294901760, %v2840_v11 }
 0x6f0   :  { %v2830_v5 = vsub.f32 %v2754_v57, %v8140_v62 }
 0x6f1   :  { %v2364_v38 = vand.u32 4294901760, %v2363_v35  ;;  %v2242_v40 = vsel %vm1155_vm2, %v2231_v37, 0 }
 0x6f2   :  { %v7686_v41 = vpop.eup %7685  ;;  %v8122_v44 = vand.u32 4294901760, %v2242_v40  ;;  %v2831_v10 = vand.u32 4294901760, %v2830_v5 }
 0x6f3   :  { %7200 = vmatprep.subr.mxu1 %v2364_v38  ;;  %v2229_v47 = vmul.f32 %v7686_v41, %v7682_v15  ;;  %v2842_v15 = vsub.f32 %v2840_v11, %v2841_v13 }
 0x6f4   :  { %7201 = vmatpush3.msra.mxu1 %v2364_v38  ;;  %v2322_v49 = vsub.f32 %v2242_v40, %v8122_v44  ;;  %v2832_v12 = vsub.f32 %v2830_v5, %v2831_v10 }
 0x6f5   :  { %7202 = vmatprep.subr.mxu1 %v2371_v46  ;;  %v2239_v52 = vsel %vm1155_vm2, %v2229_v47, 0  ;;  %v2843_v16 = vand.u32 4294901760, %v2842_v15 }
 0x6f6   :  { %7203 = vmatpush3.msra.mxu1 %v2371_v46  ;;  %v2311_v54 = vand.u32 4294901760, %v2239_v52  ;;  %v2323_v55 = vand.u32 4294901760, %v2322_v49  ;;  %v2833_v14 = vand.u32 4294901760, %v2832_v12 }
 0x6f7   :  { %7214 = vmatprep.subr.mxu1 %v2273_v26 }
 0x6f8   :  { %7204 = vmatprep.mubr.f32.mxu1 %v2311_v54  ;;  %v2312_v58 = vsub.f32 %v2239_v52, %v2311_v54  ;;  %v2324_v0 = vsub.f32 %v2322_v49, %v2323_v55 }
 0x6f9   :  { %7205 = vmatmul.mubr.f32.vlgmr.msra.gmra.mxu1 %v8122_v44 }
 0x6fa   :  { %7215 = vmatpush3.msra.mxu1 %v2273_v26  ;;  %v2313_v59 = vand.u32 4294901760, %v2312_v58  ;;  %v2325_v7 = vand.u32 4294901760, %v2324_v0 }
 0x6fb   :  { %7216 = vmatprep.subr.mxu1 %v8095_v21 }
 0x6fc   :  { %7217 = vmatpush3.msra.mxu1 %v8095_v21  ;;  %7218 = vmatprep.mubr.f32.mxu1 %v2313_v59  ;;  %v2314_v1 = vsub.f32 %v2312_v58, %v2313_v59 }
 0x6fd   :  { %7228 = vmatprep.subr.mxu1 %v2273_v26  ;;  %7219 = vmatmul.mubr.f32.vlgmr.msra.gmra.mxu1 %v2323_v55 }
 0x6fe   :  { %7229 = vmatpush3.msra.mxu1 %v2273_v26  ;;  %7232 = vmatprep.mubr.f32.mxu1 %v2311_v54  ;;  %v2315_v3 = vand.u32 4294901760, %v2314_v1 }
 0x6ff   :  { %7230 = vmatprep.subr.mxu1 %v8095_v21 }
 0x700   :  { %7231 = vmatpush3.msra.mxu1 %v8095_v21  ;;  %7197 = vmatprep.mubr.f32.mxu0 %v2315_v3 }
 0x701   :  { %7242 = vmatprep.subr.mxu1 %v2882_v6  ;;  %7198 = vmatmul.mubr.f32.vlgmr.msra.gmra.mxu0 %v2325_v7 }
 0x702   :  { %7208 = vmatpush3.msra.mxu0 %v8101_v28  ;;  %7233 = vmatmul.mubr.f32.vlgmr.msra.gmra.mxu1 %v8122_v44 }
 0x703   :  { %7243 = vmatpush3.xpose.msra.mxu1 %v2882_v6  ;;  %7209 = vmatprep.subr.mxu0 %v8098_v24 }
 0x704   :  { %7211 = vmatprep.mubr.f32.mxu0 %v2312_v58  ;;  %7244 = vmatprep.subr.mxu1 %v2889_v9 }
 0x705   :  { %7246 = vmatprep.mubr.f32.mxu1 %v8140_v62  ;;  %7210 = vmatpush3.msra.mxu0 %v8098_v24 }
 0x706   :  { %7221 = vmatprep.subr.mxu0 %v8108_v31  ;;  %7212 = vmatmul.mubr.f32.vlgmr.msra.gmra.mxu0 %v2322_v49 }
 0x707   :  { %7222 = vmatpush3.msra.mxu0 %v8108_v31  ;;  %7245 = vmatpush3.xpose.msra.mxu1 %v2889_v9 }
 0x708   :  { %7223 = vmatprep.subr.mxu0 %v8104_v29  ;;  %7225 = vmatprep.mubr.f32.mxu0 %v2311_v54 }
 0x709   :  { %7256 = vmatprep.subr.mxu1 %v8110_v33  ;;  %7224 = vmatpush3.msra.mxu0 %v8104_v29 }
 0x70a   :  { %7235 = vmatprep.subr.mxu0 %v8110_v33  ;;  %7247 = vmatmul.mubr.f32.vlgmr.msra.gmra.mxu1 %v2839_v8 }
 0x70b   :  { %7226 = vmatmul.mubr.f32.vlgmr.msra.gmra.mxu0 %v8122_v44  ;;  %7257 = vmatpush3.xpose.msra.mxu1 %v8110_v33 }
 0x70c   :  { %7236 = vmatpush3.xpose.msra.mxu0 %v8110_v33  ;;  %7260 = vmatprep.mubr.f32.mxu1 %v2831_v10 }
 0x70d   :  { %7237 = vmatprep.subr.mxu0 %v8120_v43  ;;  %7239 = vmatprep.mubr.f32.mxu0 %v2833_v14 }
 0x70e   :  { %7258 = vmatprep.subr.mxu1 %v8120_v43 }
 0x70f   :  { %7259 = vmatpush3.xpose.msra.mxu1 %v8120_v43 }
 0x710   :  { %7238 = vmatpush3.xpose.msra.mxu0 %v8120_v43  ;;  %7270 = vmatprep.subr.mxu1 %v8110_v33 }
 0x711   :  { %7249 = vmatprep.subr.mxu0 %v8125_v45 }
 0x712   :  { %7261 = vmatmul.mubr.f32.vlgmr.msra.gmra.mxu1 %v2841_v13 }
 0x713   :  { %7240 = vmatmul.mubr.f32.vlgmr.msra.gmra.mxu0 %v2843_v16  ;;  %7271 = vmatpush3.xpose.msra.mxu1 %v8110_v33 }
 0x714   :  { %7250 = vmatpush3.xpose.msra.mxu0 %v8125_v45  ;;  %7253 = vmatprep.mubr.f32.mxu0 %v2830_v5 }
 0x715   :  { %7274 = vmatprep.mubr.f32.mxu1 %v8140_v62  ;;  %7251 = vmatprep.subr.mxu0 %v8130_v53 }
 0x716   :  { %7272 = vmatprep.subr.mxu1 %v8120_v43 }
 0x717   :  { %7273 = vmatpush3.xpose.msra.mxu1 %v8120_v43 }
 0x718   :  { %7252 = vmatpush3.xpose.msra.mxu0 %v8130_v53 }
 0x719   :  { %7263 = vmatprep.subr.mxu0 %v8133_v56 }
 0x71a   :  { %7275 = vmatmul.mubr.f32.vlgmr.msra.gmra.mxu1 %v2839_v8 }
 0x71b   :  { %7254 = vmatmul.mubr.f32.vlgmr.msra.gmra.mxu0 %v2840_v11 }
 0x71c   :  { %7264 = vmatpush3.xpose.msra.mxu0 %v8133_v56  ;;  %7267 = vmatprep.mubr.f32.mxu0 %v8140_v62 }
 0x71d   :  { %7265 = vmatprep.subr.mxu0 %v8138_v60 }
 0x720   :  { %7266 = vmatpush3.xpose.msra.mxu0 %v8138_v60 }
 0x723   :  { %7268 = vmatmul.mubr.f32.vlgmr.msra.gmra.mxu0 %v2839_v8 }
 0x7b9   :  { %v7206_v18 = vpop.f32.mrf.mxu1 }
 0x7bb   :  { %v2408_v19 = vpop.f32.mrf.mxu1 }
 0x7bd   :  { %v7220_v23 = vpop.f32.mrf.mxu1 }
 0x7bf   :  { %v2572_v27 = vpop.f32.mrf.mxu1 }
 0x7c1   :  { %v7199_v21 = vpop.f32.mrf.mxu0 }
 0x7c2   :  { %v2415_v22 = vadd.f32 %v7206_v18, %v7199_v21  ;;  %v7234_v32 = vpop.f32.mrf.mxu1 }
 0x7c3   :  { %v2317_v24 = vpop.f32.mrf.mxu0 }
 0x7c4   :  { %v2409_v25 = vadd.f32 %v2408_v19, %v2317_v24  ;;  %v2736_v40 = vpop.f32.mrf.mxu1 }
 0x7c6   :  { %v7213_v26 = vpop.f32.mrf.mxu0 }
 0x7c7   :  { %v2498_v28 = vadd.f32 %v7213_v26, %v2415_v22 }
 0x7c8   :  { %v2490_v29 = vpop.f32.mrf.mxu0 }
 0x7c9   :  { %v2491_v30 = vadd.f32 %v2490_v29, %v2409_v25  ;;  %v2581_v31 = vadd.f32 %v7220_v23, %v2498_v28 }
 0x7ca   :  { %v7248_v44 = vpop.f32.mrf.mxu1 }
 0x7cb   :  { %v7227_v33 = vpop.f32.mrf.mxu0  ;;  %v2573_v34 = vadd.f32 %v2572_v27, %v2491_v30 }
 0x7cc   :  { %v2664_v35 = vadd.f32 %v7227_v33, %v2581_v31  ;;  %v2926_v49 = vpop.f32.mrf.mxu1 }
 0x7cd   :  { %v2657_v36 = vpop.f32.mrf.mxu0 }
 0x7ce   :  { %v2658_v37 = vadd.f32 %v2657_v36, %v2573_v34  ;;  %v8184_v38 = vadd.f32 %v7234_v32, %v2664_v35 }
 0x7d0   :  { %v8186_v41 = vadd.f32 %v2736_v40, %v2658_v37 }
 0x7d2   :  { %v7262_v53 = vpop.f32.mrf.mxu1 }
 0x7d3   :  { %v7241_v43 = vpop.f32.mrf.mxu0 }
 0x7d4   :  { %v2846_v46 = vadd.f32 %v7241_v43, %v7974_v48  ;;  %v3090_v58 = vpop.f32.mrf.mxu1 }
 0x7d5   :  { %v2835_v45 = vpop.f32.mrf.mxu0 }
 0x7d6   :  { %v2836_v47 = vadd.f32 %v2835_v45, %v7976_v51  ;;  %v2933_v52 = vadd.f32 %v7248_v44, %v2846_v46 }
 0x7d8   :  { %v2927_v56 = vadd.f32 %v2926_v49, %v2836_v47 }
 0x7da   :  { %v7276_v60 = vpop.f32.mrf.mxu1 }
 0x7db   :  { %v7255_v50 = vpop.f32.mrf.mxu0 }
 0x7dc   :  { %v3016_v55 = vadd.f32 %v7255_v50, %v2933_v52  ;;  %v3254_v48 = vpop.f32.mrf.mxu1 }
 0x7dd   :  { %v3008_v54 = vpop.f32.mrf.mxu0 }
 0x7de   :  { %v3009_v57 = vadd.f32 %v3008_v54, %v2927_v56  ;;  %v3099_v59 = vadd.f32 %v7262_v53, %v3016_v55 }
 0x7e0   :  { %v3091_v63 = vadd.f32 %v3090_v58, %v3009_v57 }
 0x7e3   :  { %v7269_v61 = vpop.f32.mrf.mxu0 }
 0x7e4   :  { %v3182_v62 = vadd.f32 %v7269_v61, %v3099_v59 }
 0x7e5   :  { %v3175_v0 = vpop.f32.mrf.mxu0 }
 0x7e6   :  { %v3176_v1 = vadd.f32 %v3175_v0, %v3091_v63  ;;  %v3261_v2 = vadd.f32 %v7276_v60, %v3182_v62 }
 0x7e8   :  { %v3267_v51 = vsel %vm1155_vm2, %v3261_v2, -inf  ;;  %v3255_v3 = vadd.f32 %v3254_v48, %v3176_v1 }
 0x7e9   :  { %3268 = vmax.xlane.f32.xlu1 %v3267_v51 }
 0x7ea   :  { %v3264_v4 = vsel %vm1155_vm2, %v3255_v3, -inf }
 0x7eb   :  { %3265 = vmax.xlane.f32.xlu0 %v3264_v4 }
 0x7fa   :  { %3286 = vrot.lane.b32.xlu1 %v7964_v20, %s7792_s15 }
 0x7fe   :  { %3806 = vrot.lane.b32.xlu1 %v7962_v17, %s7793_s16 }
 0x802   :  { %3804 = vrot.lane.b32.xlu1 %v7964_v20, %s7793_s16 }
 0x806   :  { %3802 = vrot.lane.b32.xlu1 %v7962_v17, %s7794_s17 }
 0x872   :  { %v3269_v5 = vpop.xlane.xlu1 %3268 }
 0x873   :  { %v3271_v6 = vsub.f32 %v3261_v2, %v3269_v5 }
 0x874   :  { %v3266_v7 = vpop.xlane.xlu0 %3265 }
 0x875   :  { %v3274_v8 = vmul.f32 1.442695, %v3271_v6  ;;  %v3270_v9 = vsub.f32 %v3255_v3, %v3266_v7 }
 0x876   :  { %v3287_v15 = vpop.permute.xlu1 %3286 }
 0x877   :  { %7687 = vpow2.f32 %v3274_v8  ;;  %v3272_v10 = vmul.f32 1.442695, %v3270_v9  ;;  %v8200_v18 = vand.u32 4294901760, %v3287_v15 }
 0x879   :  { %7689 = vpow2.f32 %v3272_v10  ;;  %v8203_v22 = vsub.f32 %v3287_v15, %v8200_v18 }
 0x87a   :  { %v3807_v21 = vpop.permute.xlu1 %3806 }
 0x87b   :  { %v3814_v25 = vsel %vm644_vm1, %v3807_v21, 0  ;;  %v8209_v27 = vand.u32 4294901760, %v8203_v22 }
 0x87c   :  { %v8215_v31 = vand.u32 4294901760, %v3814_v25 }
 0x87d   :  { %v3424_v34 = vsub.f32 %v8203_v22, %v8209_v27 }
 0x87e   :  { %v3805_v28 = vpop.permute.xlu1 %3804  ;;  %v8230_v45 = vsub.f32 %v3814_v25, %v8215_v31 }
 0x87f   :  { %v3812_v32 = vsel %vm644_vm1, %v3805_v28, 0  ;;  %v3425_v46 = vand.u32 4294901760, %v3424_v34 }
 0x880   :  { %v8225_v43 = vand.u32 4294901760, %v3812_v32  ;;  %v8238_v56 = vand.u32 4294901760, %v8230_v45 }
 0x882   :  { %v8235_v53 = vsub.f32 %v3812_v32, %v8225_v43  ;;  %v3803_v61 = vpop.permute.xlu1 %3802  ;;  %v3935_v63 = vsub.f32 %v8230_v45, %v8238_v56 }
 0x883   :  { %v3810_v2 = vsel %vm644_vm1, %v3803_v61, 0 }
 0x884   :  { %v7688_v11 = vpop.eup %7687  ;;  %v8243_v60 = vand.u32 4294901760, %v8235_v53  ;;  %v3936_v4 = vand.u32 4294901760, %v3935_v63  ;;  %v3893_v6 = vand.u32 4294901760, %v3810_v2 }
 0x885   :  { %v3279_v12 = vsel %vm1155_vm2, %v7688_v11, 0.0 }
 0x886   :  { %v7690_v13 = vpop.eup %7689  ;;  %3280 = vadd.xlane.f32.xlu0 %v3279_v12  ;;  %v3942_v51 = vsub.f32 %v8235_v53, %v8243_v60  ;;  %v3894_v9 = vsub.f32 %v3810_v2, %v3893_v6 }
 0x887   :  { %v3276_v14 = vsel %vm1155_vm2, %v7690_v13, 0.0 }
 0x888   :  { %v3943_v7 = vand.u32 4294901760, %v3942_v51 }
 0x88a   :  { %3277 = vadd.xlane.f32.xlu0 %v3276_v14 }
 0x8a0   :  { %3288 = vrot.lane.b32.xlu0 %v7962_v17, %s7792_s15 }
 0x8a4   :  { %3800 = vrot.lane.b32.xlu0 %v7964_v20, %s7794_s17 }
 0x90f   :  { %v3281_v16 = vpop.xlane.xlu0 %3280 }
 0x910   :  { %7691 = vrcp.f32 %v3281_v16 }
 0x913   :  { %v3278_v19 = vpop.xlane.xlu0 %3277 }
 0x914   :  { %7693 = vrcp.f32 %v3278_v19 }
 0x917   :  { %v3289_v23 = vpop.permute.xlu0 %3288 }
 0x918   :  { %v3327_v24 = vand.u32 4294901760, %v3289_v23 }
 0x91a   :  { %v8206_v26 = vsub.f32 %v3289_v23, %v3327_v24  ;;  %7277 = vmatprep.subr.mxu0 %v3327_v24 }
 0x91b   :  { %7278 = vmatpush3.msra.mxu0 %v3327_v24  ;;  %v3801_v50 = vpop.permute.xlu0 %3800 }
 0x91c   :  { %7279 = vmatprep.subr.mxu0 %v8200_v18  ;;  %v8213_v29 = vand.u32 4294901760, %v8206_v26  ;;  %v3808_v57 = vsel %vm644_vm1, %v3801_v50, 0 }
 0x91d   :  { %v7692_v30 = vpop.eup %7691  ;;  %7280 = vmatpush3.msra.mxu0 %v8200_v18  ;;  %v8245_v62 = vand.u32 4294901760, %v3808_v57 }
 0x91e   :  { %7291 = vmatprep.subr.mxu0 %v8206_v26  ;;  %v3417_v33 = vsub.f32 %v8206_v26, %v8213_v29  ;;  %v3285_v35 = vmul.f32 %v7692_v30, %v7688_v11  ;;  %v3895_v11 = vand.u32 4294901760, %v3894_v9 }
 0x91f   :  { %v3884_v3 = vsub.f32 %v3808_v57, %v8245_v62 }
 0x920   :  { %v3418_v36 = vand.u32 4294901760, %v3417_v33  ;;  %v3296_v37 = vsel %vm1155_vm2, %v3285_v35, 0 }
 0x921   :  { %v7694_v40 = vpop.eup %7693  ;;  %v8227_v44 = vand.u32 4294901760, %v3296_v37  ;;  %v3885_v8 = vand.u32 4294901760, %v3884_v3 }
 0x922   :  { %7284 = vmatprep.subr.mxu1 %v3418_v36  ;;  %v3283_v47 = vmul.f32 %v7694_v40, %v7690_v13  ;;  %v3896_v13 = vsub.f32 %v3894_v9, %v3895_v11 }
 0x923   :  { %7285 = vmatpush3.msra.mxu1 %v3418_v36  ;;  %v3376_v49 = vsub.f32 %v3296_v37, %v8227_v44  ;;  %v3886_v10 = vsub.f32 %v3884_v3, %v3885_v8  ;;  %v7711_v37 = vld [vmem:[#allocation5 + $0x8] sm:$0xff] }
 0x924   :  { %7286 = vmatprep.subr.mxu1 %v3425_v46  ;;  %v3293_v52 = vsel %vm1155_vm2, %v3283_v47, 0  ;;  %v3897_v14 = vand.u32 4294901760, %v3896_v13 }
 0x925   :  { %7287 = vmatpush3.msra.mxu1 %v3425_v46  ;;  %v3365_v54 = vand.u32 4294901760, %v3293_v52  ;;  %v3377_v55 = vand.u32 4294901760, %v3376_v49  ;;  %v3887_v12 = vand.u32 4294901760, %v3886_v10 }
 0x926   :  { %7298 = vmatprep.subr.mxu1 %v3327_v24 }
 0x927   :  { %7288 = vmatprep.mubr.f32.mxu1 %v3365_v54  ;;  %v3366_v58 = vsub.f32 %v3293_v52, %v3365_v54  ;;  %v3378_v0 = vsub.f32 %v3376_v49, %v3377_v55 }
 0x928   :  { %7289 = vmatmul.mubr.f32.vlgmr.msra.gmra.mxu1 %v8227_v44 }
 0x929   :  { %7299 = vmatpush3.msra.mxu1 %v3327_v24  ;;  %v3367_v59 = vand.u32 4294901760, %v3366_v58  ;;  %v3379_v5 = vand.u32 4294901760, %v3378_v0 }
 0x92a   :  { %7300 = vmatprep.subr.mxu1 %v8200_v18 }
 0x92b   :  { %7301 = vmatpush3.msra.mxu1 %v8200_v18  ;;  %7302 = vmatprep.mubr.f32.mxu1 %v3367_v59  ;;  %v3368_v1 = vsub.f32 %v3366_v58, %v3367_v59 }
 0x92c   :  { %7312 = vmatprep.subr.mxu1 %v3327_v24  ;;  %7303 = vmatmul.mubr.f32.vlgmr.msra.gmra.mxu1 %v3377_v55 }
 0x92d   :  { %7313 = vmatpush3.msra.mxu1 %v3327_v24  ;;  %7316 = vmatprep.mubr.f32.mxu1 %v3365_v54  ;;  %v3369_v48 = vand.u32 4294901760, %v3368_v1 }
 0x92e   :  { %7314 = vmatprep.subr.mxu1 %v8200_v18 }
 0x92f   :  { %7315 = vmatpush3.msra.mxu1 %v8200_v18  ;;  %7281 = vmatprep.mubr.f32.mxu0 %v3369_v48 }
 0x930   :  { %7326 = vmatprep.subr.mxu1 %v3936_v4  ;;  %7282 = vmatmul.mubr.f32.vlgmr.msra.gmra.mxu0 %v3379_v5 }
 0x931   :  { %7292 = vmatpush3.msra.mxu0 %v8206_v26  ;;  %7317 = vmatmul.mubr.f32.vlgmr.msra.gmra.mxu1 %v8227_v44 }
 0x932   :  { %7327 = vmatpush3.xpose.msra.mxu1 %v3936_v4  ;;  %7293 = vmatprep.subr.mxu0 %v8203_v22 }
 0x933   :  { %7295 = vmatprep.mubr.f32.mxu0 %v3366_v58  ;;  %7328 = vmatprep.subr.mxu1 %v3943_v7 }
 0x934   :  { %7330 = vmatprep.mubr.f32.mxu1 %v8245_v62  ;;  %7294 = vmatpush3.msra.mxu0 %v8203_v22 }
 0x935   :  { %7305 = vmatprep.subr.mxu0 %v8213_v29  ;;  %7296 = vmatmul.mubr.f32.vlgmr.msra.gmra.mxu0 %v3376_v49 }
 0x936   :  { %7306 = vmatpush3.msra.mxu0 %v8213_v29  ;;  %7329 = vmatpush3.xpose.msra.mxu1 %v3943_v7 }
 0x937   :  { %7307 = vmatprep.subr.mxu0 %v8209_v27  ;;  %7309 = vmatprep.mubr.f32.mxu0 %v3365_v54 }
 0x938   :  { %7340 = vmatprep.subr.mxu1 %v8215_v31  ;;  %7308 = vmatpush3.msra.mxu0 %v8209_v27 }
 0x939   :  { %7319 = vmatprep.subr.mxu0 %v8215_v31  ;;  %7331 = vmatmul.mubr.f32.vlgmr.msra.gmra.mxu1 %v3893_v6 }
 0x93a   :  { %7310 = vmatmul.mubr.f32.vlgmr.msra.gmra.mxu0 %v8227_v44  ;;  %7341 = vmatpush3.xpose.msra.mxu1 %v8215_v31 }
 0x93b   :  { %7320 = vmatpush3.xpose.msra.mxu0 %v8215_v31  ;;  %7344 = vmatprep.mubr.f32.mxu1 %v3885_v8 }
 0x93c   :  { %7321 = vmatprep.subr.mxu0 %v8225_v43  ;;  %7323 = vmatprep.mubr.f32.mxu0 %v3887_v12 }
 0x93d   :  { %7342 = vmatprep.subr.mxu1 %v8225_v43 }
 0x93e   :  { %7343 = vmatpush3.xpose.msra.mxu1 %v8225_v43 }
 0x93f   :  { %7322 = vmatpush3.xpose.msra.mxu0 %v8225_v43  ;;  %7354 = vmatprep.subr.mxu1 %v8215_v31 }
 0x940   :  { %7333 = vmatprep.subr.mxu0 %v8230_v45 }
 0x941   :  { %7345 = vmatmul.mubr.f32.vlgmr.msra.gmra.mxu1 %v3895_v11 }
 0x942   :  { %7324 = vmatmul.mubr.f32.vlgmr.msra.gmra.mxu0 %v3897_v14  ;;  %7355 = vmatpush3.xpose.msra.mxu1 %v8215_v31 }
 0x943   :  { %7334 = vmatpush3.xpose.msra.mxu0 %v8230_v45  ;;  %7337 = vmatprep.mubr.f32.mxu0 %v3884_v3 }
 0x944   :  { %7358 = vmatprep.mubr.f32.mxu1 %v8245_v62  ;;  %7335 = vmatprep.subr.mxu0 %v8235_v53 }
 0x945   :  { %7356 = vmatprep.subr.mxu1 %v8225_v43 }
 0x946   :  { %7357 = vmatpush3.xpose.msra.mxu1 %v8225_v43  ;;  %v7712_v43 = vld [vmem:[#allocation5] sm:$0xff] }
 0x947   :  { %7336 = vmatpush3.xpose.msra.mxu0 %v8235_v53 }
 0x948   :  { %7347 = vmatprep.subr.mxu0 %v8238_v56 }
 0x949   :  { %7359 = vmatmul.mubr.f32.vlgmr.msra.gmra.mxu1 %v3893_v6 }
 0x94a   :  { %7338 = vmatmul.mubr.f32.vlgmr.msra.gmra.mxu0 %v3894_v9 }
 0x94b   :  { %7348 = vmatpush3.xpose.msra.mxu0 %v8238_v56  ;;  %7351 = vmatprep.mubr.f32.mxu0 %v8245_v62 }
 0x94c   :  { %7349 = vmatprep.subr.mxu0 %v8243_v60 }
 0x94f   :  { %7350 = vmatpush3.xpose.msra.mxu0 %v8243_v60 }
 0x952   :  { %7352 = vmatmul.mubr.f32.vlgmr.msra.gmra.mxu0 %v3893_v6 }
 0x9e8   :  { %v7290_v15 = vpop.f32.mrf.mxu1 }
 0x9ea   :  { %v3462_v16 = vpop.f32.mrf.mxu1 }
 0x9ec   :  { %v7304_v19 = vpop.f32.mrf.mxu1 }
 0x9ee   :  { %v3626_v24 = vpop.f32.mrf.mxu1 }
 0x9f0   :  { %v7283_v18 = vpop.f32.mrf.mxu0 }
 0x9f1   :  { %v7318_v27 = vpop.f32.mrf.mxu1  ;;  %v3469_v51 = vadd.f32 %v7290_v15, %v7283_v18 }
 0x9f2   :  { %v3371_v21 = vpop.f32.mrf.mxu0 }
 0x9f3   :  { %v3463_v22 = vadd.f32 %v3462_v16, %v3371_v21  ;;  %v3790_v32 = vpop.f32.mrf.mxu1 }
 0x9f5   :  { %v7297_v23 = vpop.f32.mrf.mxu0 }
 0x9f6   :  { %v3552_v3 = vadd.f32 %v7297_v23, %v3469_v51 }
 0x9f7   :  { %v3544_v25 = vpop.f32.mrf.mxu0 }
 0x9f8   :  { %v3545_v26 = vadd.f32 %v3544_v25, %v3463_v22  ;;  %v3635_v4 = vadd.f32 %v7304_v19, %v3552_v3 }
 0x9f9   :  { %v7332_v35 = vpop.f32.mrf.mxu1 }
 0x9fa   :  { %v7311_v28 = vpop.f32.mrf.mxu0  ;;  %v3627_v29 = vadd.f32 %v3626_v24, %v3545_v26 }
 0x9fb   :  { %v3980_v45 = vpop.f32.mrf.mxu1  ;;  %v3718_v5 = vadd.f32 %v7311_v28, %v3635_v4 }
 0x9fc   :  { %v3711_v30 = vpop.f32.mrf.mxu0 }
 0x9fd   :  { %v3712_v31 = vadd.f32 %v3711_v30, %v3627_v29  ;;  %v3797_v6 = vadd.f32 %v7318_v27, %v3718_v5 }
 0x9ff   :  { %v3791_v33 = vadd.f32 %v3790_v32, %v3712_v31 }
 0xa01   :  { %v7346_v49 = vpop.f32.mrf.mxu1 }
 0xa02   :  { %v7325_v34 = vpop.f32.mrf.mxu0 }
 0xa03   :  { %v3900_v40 = vadd.f32 %v7711_v37, %v7325_v34  ;;  %v4144_v55 = vpop.f32.mrf.mxu1 }
 0xa04   :  { %v3889_v36 = vpop.f32.mrf.mxu0 }
 0xa05   :  { %v3890_v44 = vadd.f32 %v7712_v43, %v3889_v36  ;;  %v3987_v47 = vadd.f32 %v7332_v35, %v3900_v40 }
 0xa07   :  { %v3981_v53 = vadd.f32 %v3980_v45, %v3890_v44 }
 0xa09   :  { %v7360_v57 = vpop.f32.mrf.mxu1 }
 0xa0a   :  { %v7339_v46 = vpop.f32.mrf.mxu0 }
 0xa0b   :  { %v4070_v52 = vadd.f32 %v7339_v46, %v3987_v47  ;;  %v4308_v0 = vpop.f32.mrf.mxu1 }
 0xa0c   :  { %v4062_v50 = vpop.f32.mrf.mxu0 }
 0xa0d   :  { %v4063_v54 = vadd.f32 %v4062_v50, %v3981_v53  ;;  %v4153_v56 = vadd.f32 %v7346_v49, %v4070_v52  ;;  %v4888_v50 = vld [vmem:[%s8722_s4 + $0x18] sm:$0xff] }
 0xa0e   :  { %v8304_v52 = vand.u32 4294901760, %v4888_v50 }
 0xa0f   :  { %v4145_v60 = vadd.f32 %v4144_v55, %v4063_v54 }
 0xa10   :  { %v8307_v53 = vsub.f32 %v4888_v50, %v8304_v52 }
 0xa12   :  { %v7353_v58 = vpop.f32.mrf.mxu0  ;;  %v8312_v54 = vand.u32 4294901760, %v8307_v53 }
 0xa13   :  { %v4236_v59 = vadd.f32 %v7353_v58, %v4153_v56 }
 0xa14   :  { %v4229_v61 = vpop.f32.mrf.mxu0  ;;  %v5012_v55 = vsub.f32 %v8307_v53, %v8312_v54 }
 0xa15   :  { %v4230_v62 = vadd.f32 %v4229_v61, %v4145_v60  ;;  %v4315_v63 = vadd.f32 %v7360_v57, %v4236_v59  ;;  %v4887_v57 = vld [vmem:[%s8722_s4 + $0x10] sm:$0xff]  ;;  %v4886_v60 = vld [vmem:[%s8722_s4 + $0x8] sm:$0xff] }
 0xa16   :  { %v5013_v56 = vand.u32 4294901760, %v5012_v55  ;;  %v8319_v58 = vand.u32 4294901760, %v4887_v57 }
 0xa17   :  { %v4321_v1 = vsel %vm1155_vm2, %v4315_v63, -inf  ;;  %v4309_v2 = vadd.f32 %v4308_v0, %v4230_v62  ;;  %v8327_v62 = vand.u32 4294901760, %v4886_v60 }
 0xa18   :  { %4322 = vmax.xlane.f32.xlu1 %v4321_v1  ;;  %v8325_v61 = vsub.f32 %v4887_v57, %v8319_v58 }
 0xa19   :  { %v4318_v48 = vsel %vm1155_vm2, %v4309_v2, -inf  ;;  %v8338_v1 = vsub.f32 %v4886_v60, %v8327_v62 }
 0xa1a   :  { %4319 = vmax.xlane.f32.xlu0 %v4318_v48  ;;  %v8335_v0 = vand.u32 4294901760, %v8325_v61 }
 0xa1b   :  { %v8347_v3 = vand.u32 4294901760, %v8338_v1 }
 0xa1c   :  { %v5019_v51 = vsub.f32 %v8325_v61, %v8335_v0 }
 0xa1e   :  { %v5020_v5 = vand.u32 4294901760, %v5019_v51 }
 0xa29   :  { %4340 = vrot.lane.b32.xlu1 %v7964_v20, %s7795_s18 }
 0xa2d   :  { %4856 = vrot.lane.b32.xlu1 %v8186_v41, %s7783_s13 }
 0xa31   :  { %4858 = vrot.lane.b32.xlu1 %v8184_v38, %s7783_s13 }
 0xa35   :  { %4866 = vrot.lane.b32.xlu1 %v3797_v6, %s7796_s19  ;;  %v5026_v6 = vsub.f32 %v8338_v1, %v8347_v3 }
 0xaa1   :  { %v4323_v7 = vpop.xlane.xlu1 %4322 }
 0xaa2   :  { %v4325_v8 = vsub.f32 %v4315_v63, %v4323_v7  ;;  %v4885_v63 = vld [vmem:[%s8722_s4] sm:$0xff]  ;;  %s7797_s4 = smov 24  }
 0xaa3   :  { %v4320_v9 = vpop.xlane.xlu0 %4319 }
 0xaa4   :  { %v4328_v10 = vmul.f32 1.442695, %v4325_v8  ;;  %v4324_v11 = vsub.f32 %v4309_v2, %v4320_v9  ;;  %v8340_v2 = vand.u32 4294901760, %v4885_v63 }
 0xaa5   :  { %v4341_v38 = vpop.permute.xlu1 %4340 }
 0xaa6   :  { %7695 = vpow2.f32 %v4328_v10  ;;  %v4326_v12 = vmul.f32 1.442695, %v4324_v11  ;;  %v4384_v16 = vand.u32 4294901760, %v4341_v38  ;;  %v8350_v4 = vsub.f32 %v4885_v63, %v8340_v2 }
 0xaa7   :  { %v5027_v10 = vand.u32 4294901760, %v5026_v6 }
 0xaa8   :  { %7697 = vpow2.f32 %v4326_v12  ;;  %v4476_v19 = vsub.f32 %v4341_v38, %v4384_v16  ;;  %v8357_v7 = vand.u32 4294901760, %v8350_v4 }
 0xaaa   :  { %v4477_v24 = vand.u32 4294901760, %v4476_v19  ;;  %v5033_v11 = vsub.f32 %v8350_v4, %v8357_v7 }
 0xaac   :  { %v4478_v27 = vsub.f32 %v4476_v19, %v4477_v24 }
 0xab3   :  { %v7696_v20 = vpop.eup %7695 }
 0xab4   :  { %v4333_v13 = vsel %vm1155_vm2, %v7696_v20, 0.0 }
 0xab5   :  { %v7698_v14 = vpop.eup %7697  ;;  %4334 = vadd.xlane.f32.xlu0 %v4333_v13  ;;  %v5034_v13 = vand.u32 4294901760, %v5033_v11 }
 0xab6   :  { %v4330_v41 = vsel %vm1155_vm2, %v7698_v14, 0.0 }
 0xab9   :  { %4331 = vadd.xlane.f32.xlu0 %v4330_v41 }
 0xacf   :  { %4342 = vrot.lane.b32.xlu0 %v7962_v17, %s7795_s18 }
 0xad3   :  { %4864 = vrot.lane.b32.xlu0 %v3791_v33, %s7796_s19  ;;  %v4479_v33 = vand.u32 4294901760, %v4478_v27 }
 0xb3e   :  { %v4335_v15 = vpop.xlane.xlu0 %4334 }
 0xb3f   :  { %7699 = vrcp.f32 %v4335_v15 }
 0xb42   :  { %v4332_v18 = vpop.xlane.xlu0 %4331 }
 0xb43   :  { %7701 = vrcp.f32 %v4332_v18 }
 0xb46   :  { %v4343_v21 = vpop.permute.xlu0 %4342 }
 0xb47   :  { %v4381_v22 = vand.u32 4294901760, %v4343_v21 }
 0xb49   :  { %v4469_v23 = vsub.f32 %v4343_v21, %v4381_v22  ;;  %7361 = vmatprep.subr.mxu0 %v4381_v22 }
 0xb4a   :  { %7362 = vmatpush3.msra.mxu0 %v4381_v22 }
 0xb4b   :  { %7363 = vmatprep.subr.mxu0 %v4384_v16  ;;  %v4470_v25 = vand.u32 4294901760, %v4469_v23 }
 0xb4c   :  { %v7700_v26 = vpop.eup %7699  ;;  %7364 = vmatpush3.msra.mxu0 %v4384_v16 }
 0xb4d   :  { %7375 = vmatprep.subr.mxu0 %v4469_v23  ;;  %v4471_v17 = vsub.f32 %v4469_v23, %v4470_v25  ;;  %v4339_v28 = vmul.f32 %v7700_v26, %v7696_v20 }
 0xb4f   :  { %v4472_v29 = vand.u32 4294901760, %v4471_v17  ;;  %v4350_v30 = vsel %vm1155_vm2, %v4339_v28, 0 }
 0xb50   :  { %v7702_v31 = vpop.eup %7701  ;;  %v4429_v32 = vand.u32 4294901760, %v4350_v30 }
 0xb51   :  { %7368 = vmatprep.subr.mxu1 %v4472_v29  ;;  %v4337_v34 = vmul.f32 %v7702_v31, %v7698_v14 }
 0xb52   :  { %7369 = vmatpush3.msra.mxu1 %v4472_v29  ;;  %v4430_v35 = vsub.f32 %v4350_v30, %v4429_v32  ;;  %v4857_v29 = vpop.permute.xlu1 %4856 }
 0xb53   :  { %7370 = vmatprep.subr.mxu1 %v4479_v33  ;;  %v4347_v36 = vsel %vm1155_vm2, %v4337_v34, 0 }
 0xb54   :  { %7371 = vmatpush3.msra.mxu1 %v4479_v33  ;;  %v4419_v37 = vand.u32 4294901760, %v4347_v36  ;;  %v4431_v40 = vand.u32 4294901760, %v4430_v35 }
 0xb55   :  { %7382 = vmatprep.subr.mxu1 %v4381_v22 }
 0xb56   :  { %7372 = vmatprep.mubr.f32.mxu1 %v4419_v37  ;;  %v4420_v43 = vsub.f32 %v4347_v36, %v4419_v37  ;;  %v4432_v45 = vsub.f32 %v4430_v35, %v4431_v40  ;;  %v4859_v30 = vpop.permute.xlu1 %4858  ;;  %v4878_v36 = vsel %vm644_vm1, %v8081_v42, %v4857_v29  ;;  %v5453_v29 = vld [vmem:[%s8723_s5 + $0x10] sm:$0xff] }
 0xb57   :  { %7373 = vmatmul.mubr.f32.vlgmr.msra.gmra.mxu1 %v4429_v32  ;;  %v4879_v33 = vsel %vm644_vm1, %v8079_v39, %v4859_v30  ;;  %v5452_v30 = vld [vmem:[%s8723_s5 + $0x8] sm:$0xff] }
 0xb58   :  { %7383 = vmatpush3.msra.mxu1 %v4381_v22  ;;  %v4421_v44 = vand.u32 4294901760, %v4420_v43  ;;  %v4433_v49 = vand.u32 4294901760, %v4432_v45 }
 0xb59   :  { %7384 = vmatprep.subr.mxu1 %v4384_v16 }
 0xb5a   :  { %7385 = vmatpush3.msra.mxu1 %v4384_v16  ;;  %7386 = vmatprep.mubr.f32.mxu1 %v4421_v44  ;;  %v4422_v46 = vsub.f32 %v4420_v43, %v4421_v44  ;;  %v4867_v31 = vpop.permute.xlu1 %4866 }
 0xb5b   :  { %7396 = vmatprep.subr.mxu1 %v4381_v22  ;;  %7387 = vmatmul.mubr.f32.vlgmr.msra.gmra.mxu1 %v4431_v40  ;;  %v4881_v34 = vsel %vm1155_vm2, %v4879_v33, %v4867_v31  ;;  %v8428_v31 = vand.u32 4294901760, %v5453_v29 }
 0xb5c   :  { %7397 = vmatpush3.msra.mxu1 %v4381_v22  ;;  %7400 = vmatprep.mubr.f32.mxu1 %v4419_v37  ;;  %v4423_v47 = vand.u32 4294901760, %v4422_v46 }
 0xb5d   :  { %7398 = vmatprep.subr.mxu1 %v4384_v16 }
 0xb5e   :  { %7399 = vmatpush3.msra.mxu1 %v4384_v16  ;;  %7365 = vmatprep.mubr.f32.mxu0 %v4423_v47 }
 0xb5f   :  { %7366 = vmatmul.mubr.f32.vlgmr.msra.gmra.mxu0 %v4433_v49  ;;  %7401 = vmatmul.mubr.f32.vlgmr.msra.gmra.mxu1 %v4429_v32 }
 0xb60   :  { %7376 = vmatpush3.msra.mxu0 %v4469_v23  ;;  %7379 = vmatprep.mubr.f32.mxu0 %v4420_v43 }
 0xb61   :  { %7377 = vmatprep.subr.mxu0 %v4476_v19  ;;  %7414 = vmatprep.subr.mxu1 %v5013_v56 }
 0xb62   :  { %7378 = vmatpush3.msra.mxu0 %v4476_v19  ;;  %7415 = vmatpush3.msra.mxu1 %v5013_v56 }
 0xb63   :  { %7389 = vmatprep.subr.mxu0 %v4470_v25  ;;  %7380 = vmatmul.mubr.f32.vlgmr.msra.gmra.mxu0 %v4430_v35 }
 0xb64   :  { %7390 = vmatpush3.msra.mxu0 %v4470_v25  ;;  %7393 = vmatprep.mubr.f32.mxu0 %v4419_v37 }
 0xb65   :  { %7391 = vmatprep.subr.mxu0 %v4477_v24  ;;  %7416 = vmatprep.subr.mxu1 %v5020_v5 }
 0xb66   :  { %7392 = vmatpush3.msra.mxu0 %v4477_v24  ;;  %7417 = vmatpush3.msra.mxu1 %v5020_v5 }
 0xb67   :  { %7394 = vmatmul.mubr.f32.vlgmr.msra.gmra.mxu0 %v4429_v32  ;;  %7403 = vmatprep.subr.mxu0 %v8304_v52  ;;  %v4865_v32 = vpop.permute.xlu0 %4864 }
 0xb68   :  { %7404 = vmatpush3.msra.mxu0 %v8304_v52  ;;  %7418 = vmatprep.subr.mxu1 %v5027_v10  ;;  %v4880_v40 = vsel %vm1155_vm2, %v4878_v36, %v4865_v32  ;;  %v8430_v32 = vand.u32 4294901760, %v5452_v30 }
 0xb69   :  { %7405 = vmatprep.subr.mxu0 %v8319_v58  ;;  %7419 = vmatpush3.msra.mxu1 %v5027_v10 }
 0xb6a   :  { %7406 = vmatpush3.msra.mxu0 %v8319_v58  ;;  %7420 = vmatprep.subr.mxu1 %v5034_v13 }
 0xb6b   :  { %7407 = vmatprep.subr.mxu0 %v8327_v62  ;;  %7421 = vmatpush3.msra.mxu1 %v5034_v13 }
 0xb6c   :  { %7408 = vmatpush3.msra.mxu0 %v8327_v62  ;;  %7436 = vmatprep.subr.mxu1 %v8304_v52 }
 0xb6d   :  { %7409 = vmatprep.subr.mxu0 %v8340_v2 }
 0xb6e   :  { %7410 = vmatpush3.msra.mxu0 %v8340_v2 }
 0xb6f   :  { %7425 = vmatprep.subr.mxu0 %v8307_v53 }
 0xc17   :  { %v7374_v59 = vpop.f32.mrf.mxu1 }
 0xc19   :  { %v4516_v48 = vpop.f32.mrf.mxu1 }
 0xc1b   :  { %v7388_v8 = vpop.f32.mrf.mxu1 }
 0xc1d   :  { %v4680_v14 = vpop.f32.mrf.mxu1 }
 0xc1f   :  { %v7367_v9 = vpop.f32.mrf.mxu0  ;;  %v7402_v21 = vpop.f32.mrf.mxu1 }
 0xc20   :  { %v4523_v20 = vadd.f32 %v7374_v59, %v7367_v9 }
 0xc21   :  { %v4425_v12 = vpop.f32.mrf.mxu0  ;;  %v4844_v27 = vpop.f32.mrf.mxu1 }
 0xc22   :  { %v4517_v38 = vadd.f32 %v4516_v48, %v4425_v12  ;;  %v7713_v12 = vld [vmem:[#allocation2 + $0x8] sm:$0xff] }
 0xc23   :  { %v7381_v41 = vpop.f32.mrf.mxu0 }
 0xc24   :  { %v4606_v15 = vadd.f32 %v7381_v41, %v4523_v20 }
 0xc25   :  { %v4598_v16 = vpop.f32.mrf.mxu0 }
 0xc26   :  { %v4599_v18 = vadd.f32 %v4598_v16, %v4517_v38  ;;  %v4689_v19 = vadd.f32 %v7388_v8, %v4606_v15 }
 0xc27   :  { %v7395_v22 = vpop.f32.mrf.mxu0 }
 0xc28   :  { %v4772_v23 = vadd.f32 %v7395_v22, %v4689_v19  ;;  %v4681_v24 = vadd.f32 %v4680_v14, %v4599_v18  ;;  %v7714_v14 = vld [vmem:[#allocation2] sm:$0xff] }
 0xc29   :  { %v4765_v25 = vpop.f32.mrf.mxu0 }
 0xc2a   :  { %v4851_v26 = vadd.f32 %v7402_v21, %v4772_v23  ;;  %v4766_v17 = vadd.f32 %v4765_v25, %v4681_v24 }
 0xc2c   :  { %v4845_v28 = vadd.f32 %v4844_v27, %v4766_v17  ;;  %4874 = vrot.lane.b32.xlu1 %v4851_v26, %s7797_s4  ;;  %v5454_v27 = vld [vmem:[%s8723_s5 + $0x18] sm:$0xff] }
 0xc2e   :  { %4872 = vrot.lane.b32.xlu0 %v4845_v28, %s7797_s4  ;;  %v8420_v28 = vand.u32 4294901760, %v5454_v27 }
 0xc30   :  { %v8433_v33 = vsub.f32 %v5454_v27, %v8420_v28 }
 0xc32   :  { %v8444_v36 = vand.u32 4294901760, %v8433_v33 }
 0xc9e   :  { %v4875_v35 = vpop.permute.xlu1 %4874 }
 0xc9f   :  { %v4884_v37 = vsel %vm4882_vm3, %v4881_v34, %v4875_v35  ;;  %v8437_v34 = vsub.f32 %v5453_v29, %v8428_v31  ;;  %v8440_v35 = vsub.f32 %v5452_v30, %v8430_v32 }
 0xca0   :  { %v4893_v43 = vsel %vm65_vm0, %v4884_v37, 0  ;;  %v4873_v44 = vpop.permute.xlu0 %4872 }
 0xca1   :  { %v4974_v45 = vand.u32 4294901760, %v4893_v43  ;;  %v4883_v46 = vsel %vm4882_vm3, %v4880_v40, %v4873_v44  ;;  %v8448_v37 = vand.u32 4294901760, %v8437_v34  ;;  %v8451_v40 = vand.u32 4294901760, %v8440_v35 }
 0xca2   :  { %v4890_v47 = vsel %vm65_vm0, %v4883_v46, 0  ;;  %v5585_v44 = vsub.f32 %v8433_v33, %v8444_v36 }
 0xca3   :  { %v4975_v49 = vsub.f32 %v4893_v43, %v4974_v45  ;;  %v4964_v50 = vand.u32 4294901760, %v4890_v47  ;;  %v5451_v43 = vld [vmem:[%s8723_s5] sm:$0xff]  ;;  %v5592_v46 = vsub.f32 %v8437_v34, %v8448_v37 }
 0xca5   :  { %v4965_v55 = vsub.f32 %v4890_v47, %v4964_v50  ;;  %7422 = vmatprep.mubr.f32.mxu1 %v4964_v50  ;;  %v4976_v39 = vand.u32 4294901760, %v4975_v49  ;;  %v5599_v47 = vsub.f32 %v8440_v35, %v8451_v40 }
 0xca6   :  { %7423 = vmatmul.mubr.f32.vlgmr.msra.gmra.mxu1 %v4974_v45 }
 0xca7   :  { %7437 = vmatpush3.msra.mxu1 %v8304_v52  ;;  %v4966_v56 = vand.u32 4294901760, %v4965_v55  ;;  %v4977_v57 = vsub.f32 %v4975_v49, %v4976_v39 }
 0xca8   :  { %7438 = vmatprep.subr.mxu1 %v8319_v58 }
 0xca9   :  { %7439 = vmatpush3.msra.mxu1 %v8319_v58  ;;  %7444 = vmatprep.mubr.f32.mxu1 %v4966_v56  ;;  %v4967_v42 = vsub.f32 %v4965_v55, %v4966_v56  ;;  %v4978_v60 = vand.u32 4294901760, %v4977_v57 }
 0xcaa   :  { %7440 = vmatprep.subr.mxu1 %v8327_v62 }
 0xcab   :  { %7441 = vmatpush3.msra.mxu1 %v8327_v62  ;;  %v4968_v59 = vand.u32 4294901760, %v4967_v42 }
 0xcac   :  { %7442 = vmatprep.subr.mxu1 %v8340_v2 }
 0xcad   :  { %7443 = vmatpush3.msra.mxu1 %v8340_v2  ;;  %7411 = vmatprep.mubr.f32.mxu0 %v4968_v59 }
 0xcae   :  { %7445 = vmatmul.mubr.f32.vlgmr.msra.gmra.mxu1 %v4976_v39  ;;  %7458 = vmatprep.subr.mxu1 %v8304_v52  ;;  %v5600_v39 = vand.u32 4294901760, %v5599_v47 }
 0xcaf   :  { %7412 = vmatmul.mubr.f32.vlgmr.msra.gmra.mxu0 %v4978_v60  ;;  %7459 = vmatpush3.msra.mxu1 %v8304_v52 }
 0xcb0   :  { %7426 = vmatpush3.msra.mxu0 %v8307_v53  ;;  %7466 = vmatprep.mubr.f32.mxu1 %v4964_v50 }
 0xcb1   :  { %7427 = vmatprep.subr.mxu0 %v8325_v61  ;;  %7433 = vmatprep.mubr.f32.mxu0 %v4965_v55  ;;  %v5593_v55 = vand.u32 4294901760, %v5592_v46 }
 0xcb2   :  { %7460 = vmatprep.subr.mxu1 %v8319_v58  ;;  %7428 = vmatpush3.msra.mxu0 %v8325_v61 }
 0xcb3   :  { %7461 = vmatpush3.msra.mxu1 %v8319_v58  ;;  %7429 = vmatprep.subr.mxu0 %v8338_v1 }
 0xcb4   :  { %7462 = vmatprep.subr.mxu1 %v8327_v62  ;;  %7430 = vmatpush3.msra.mxu0 %v8338_v1 }
 0xcb5   :  { %7463 = vmatpush3.msra.mxu1 %v8327_v62  ;;  %7431 = vmatprep.subr.mxu0 %v8350_v4 }
 0xcb6   :  { %7464 = vmatprep.subr.mxu1 %v8340_v2  ;;  %7432 = vmatpush3.msra.mxu0 %v8350_v4 }
 0xcb7   :  { %7465 = vmatpush3.msra.mxu1 %v8340_v2  ;;  %7434 = vmatmul.mubr.f32.vlgmr.msra.gmra.mxu0 %v4975_v49  ;;  %v5586_v49 = vand.u32 4294901760, %v5585_v44 }
 0xcb8   :  { %7447 = vmatprep.subr.mxu0 %v8312_v54  ;;  %7467 = vmatmul.mubr.f32.vlgmr.msra.gmra.mxu1 %v4974_v45 }
 0xcb9   :  { %7448 = vmatpush3.msra.mxu0 %v8312_v54  ;;  %7455 = vmatprep.mubr.f32.mxu0 %v4964_v50 }
 0xcba   :  { %7449 = vmatprep.subr.mxu0 %v8335_v0  ;;  %7480 = vmatprep.subr.mxu1 %v5586_v49 }
 0xcbb   :  { %7450 = vmatpush3.msra.mxu0 %v8335_v0  ;;  %7481 = vmatpush3.msra.mxu1 %v5586_v49 }
 0xcbc   :  { %7451 = vmatprep.subr.mxu0 %v8347_v3  ;;  %7482 = vmatprep.subr.mxu1 %v5593_v55 }
 0xcbd   :  { %7452 = vmatpush3.msra.mxu0 %v8347_v3  ;;  %7483 = vmatpush3.msra.mxu1 %v5593_v55 }
 0xcbe   :  { %7453 = vmatprep.subr.mxu0 %v8357_v7  ;;  %7484 = vmatprep.subr.mxu1 %v5600_v39 }
 0xcbf   :  { %7454 = vmatpush3.msra.mxu0 %v8357_v7  ;;  %7485 = vmatpush3.msra.mxu1 %v5600_v39 }
 0xcc0   :  { %7456 = vmatmul.mubr.f32.vlgmr.msra.gmra.mxu0 %v4974_v45  ;;  %7469 = vmatprep.subr.mxu0 %v8420_v28  ;;  %v8459_v45 = vand.u32 4294901760, %v5451_v43 }
 0xcc1   :  { %7470 = vmatpush3.msra.mxu0 %v8420_v28 }
 0xcc2   :  { %7471 = vmatprep.subr.mxu0 %v8428_v31  ;;  %v8468_v50 = vsub.f32 %v5451_v43, %v8459_v45 }
 0xcc3   :  { %7472 = vmatpush3.msra.mxu0 %v8428_v31 }
 0xcc4   :  { %7473 = vmatprep.subr.mxu0 %v8430_v32  ;;  %v8473_v56 = vand.u32 4294901760, %v8468_v50 }
 0xcc5   :  { %7474 = vmatpush3.msra.mxu0 %v8430_v32 }
 0xcc6   :  { %7475 = vmatprep.subr.mxu0 %v8459_v45  ;;  %v5606_v42 = vsub.f32 %v8468_v50, %v8473_v56 }
 0xcc7   :  { %7476 = vmatpush3.msra.mxu0 %v8459_v45 }
 0xcc8   :  { %7491 = vmatprep.subr.mxu0 %v8433_v33  ;;  %v5607_v57 = vand.u32 4294901760, %v5606_v42 }
 0xcca   :  { %7486 = vmatprep.subr.mxu1 %v5607_v57 }
 0xccb   :  { %7487 = vmatpush3.msra.mxu1 %v5607_v57 }
 0xccc   :  { %7502 = vmatprep.subr.mxu1 %v8420_v28 }
 0xd66   :  { %v7424_v53 = vpop.f32.mrf.mxu1 }
 0xd68   :  { %v5071_v62 = vpop.f32.mrf.mxu1 }
 0xd6e   :  { %v7446_v63 = vpop.f32.mrf.mxu1 }
 0xd6f   :  { %v7413_v52 = vpop.f32.mrf.mxu0 }
 0xd70   :  { %v5078_v54 = vadd.f32 %v7424_v53, %v7413_v52  ;;  %v5241_v51 = vpop.f32.mrf.mxu1 }
 0xd71   :  { %v4970_v58 = vpop.f32.mrf.mxu0 }
 0xd72   :  { %v5072_v2 = vadd.f32 %v5071_v62, %v4970_v58 }
 0xd77   :  { %v7435_v61 = vpop.f32.mrf.mxu0 }
 0xd78   :  { %v5165_v48 = vadd.f32 %v7435_v61, %v5078_v54  ;;  %v7468_v5 = vpop.f32.mrf.mxu1 }
 0xd79   :  { %v5157_v1 = vpop.f32.mrf.mxu0 }
 0xd7a   :  { %v5158_v0 = vadd.f32 %v5157_v1, %v5072_v2  ;;  %v5250_v4 = vadd.f32 %v7446_v63, %v5165_v48  ;;  %v5413_v11 = vpop.f32.mrf.mxu1 }
 0xd7c   :  { %v5242_v8 = vadd.f32 %v5241_v51, %v5158_v0 }
 0xd80   :  { %v7457_v3 = vpop.f32.mrf.mxu0 }
 0xd81   :  { %v5339_v6 = vadd.f32 %v7457_v3, %v5250_v4 }
 0xd82   :  { %v5332_v9 = vpop.f32.mrf.mxu0 }
 0xd83   :  { %v5420_v7 = vadd.f32 %v7468_v5, %v5339_v6  ;;  %v5333_v10 = vadd.f32 %v5332_v9, %v5242_v8 }
 0xd85   :  { %v8401_v20 = vadd.f32 %v7713_v12, %v5420_v7  ;;  %v5414_v13 = vadd.f32 %v5413_v11, %v5333_v10  ;;  %v6021_v11 = vld [vmem:[%s8725_s7 + $0x38] sm:$0xff] }
 0xd86   :  { %v8515_v12 = vand.u32 4294901760, %v6021_v11 }
 0xd87   :  { %v8403_v41 = vadd.f32 %v7714_v14, %v5414_v13  ;;  %v5428_v38 = vsel %vm65_vm0, %v8401_v20, 0.0  ;;  %v6020_v13 = vld [vmem:[%s8725_s7 + $0x30] sm:$0xff] }
 0xd88   :  { %5429 = vadd.xlane.f32.xlu1 %v5428_v38  ;;  %v8521_v14 = vsub.f32 %v6021_v11, %v8515_v12  ;;  %v8523_v38 = vand.u32 4294901760, %v6020_v13 }
 0xd89   :  { %v5425_v15 = vsel %vm65_vm0, %v8403_v41, 0.0 }
 0xd8a   :  { %5426 = vadd.xlane.f32.xlu0 %v5425_v15  ;;  %v6019_v15 = vld [vmem:[%s8725_s7 + $0x28] sm:$0xff] }
 0xe11   :  { %v5430_v16 = vpop.xlane.xlu1 %5429 }
 0xe12   :  { %v5432_v18 = vmul.f32 0.03125, %v5430_v16  ;;  %v6018_v16 = vld [vmem:[%s8725_s7 + $0x20] sm:$0xff] }
 0xe13   :  { %v5427_v19 = vpop.xlane.xlu0 %5426 }
 0xe14   :  { %v5431_v21 = vmul.f32 0.03125, %v5427_v19  ;;  %v8410_v22 = vsub.f32 %v8401_v20, %v5432_v18  ;;  %v6017_v18 = vld [vmem:[%s8725_s7 + $0x18] sm:$0xff]  ;;  %v8537_v19 = vand.u32 4294901760, %v8521_v14 }
 0xe16   :  { %v5433_v23 = vsub.f32 %v8403_v41, %v5431_v21  ;;  %v5436_v26 = vmul.f32 %v8410_v22, %v8410_v22  ;;  %v8540_v21 = vsub.f32 %v6020_v13, %v8523_v38  ;;  %v6149_v30 = vsub.f32 %v8521_v14, %v8537_v19 }
 0xe18   :  { %v5435_v24 = vmul.f32 %v5433_v23, %v5433_v23  ;;  %v5440_v17 = vsel %vm65_vm0, %v5436_v26, 0.0  ;;  %v6014_v26 = vld [vmem:[%s8725_s7] sm:$0xff] }
 0xe19   :  { %v8563_v29 = vand.u32 4294901760, %v6014_v26 }
 0xe1a   :  { %v5437_v25 = vsel %vm65_vm0, %v5435_v24, 0.0  ;;  %v6016_v24 = vld [vmem:[%s8725_s7 + $0x10] sm:$0xff] }
 0xe1b   :  { %5438 = vadd.xlane.f32.xlu0 %v5437_v25  ;;  %v6015_v25 = vld [vmem:[%s8725_s7 + $0x8] sm:$0xff]  ;;  %v8558_v27 = vand.u32 4294901760, %v6016_v24 }
 0xe1f   :  { %5441 = vadd.xlane.f32.xlu0 %v5440_v17  ;;  %v8556_v17 = vand.u32 4294901760, %v6017_v18 }
 0xea4   :  { %v5439_v59 = vpop.xlane.xlu0 %5438 }
 0xea5   :  { %v5443_v60 = vmul.f32 0.03125, %v5439_v59 }
 0xea7   :  { %v5445_v52 = vadd.f32 1e-05, %v5443_v60 }
 0xea8   :  { %v5442_v53 = vpop.xlane.xlu0 %5441 }
 0xea9   :  { %7703 = vrsqrt.f32 %v5445_v52  ;;  %v5444_v58 = vmul.f32 0.03125, %v5442_v53 }
 0xeab   :  { %v5446_v61 = vadd.f32 1e-05, %v5444_v58 }
 0xead   :  { %7705 = vrsqrt.f32 %v5446_v61 }
 0xeb6   :  { %v7704_v62 = vpop.eup %7703 }
 0xeb7   :  { %v5449_v54 = vmul.f32 %v7704_v62, %v5433_v23  ;;  %v8544_v23 = vand.u32 4294901760, %v6018_v16 }
 0xeb9   :  { %v5463_v63 = vsel %vm65_vm0, %v5449_v54, 0 }
 0xeba   :  { %v7706_v1 = vpop.eup %7705  ;;  %v5537_v2 = vand.u32 4294901760, %v5463_v63 }
 0xebb   :  { %v5450_v48 = vmul.f32 %v7706_v1, %v8410_v22  ;;  %v8542_v22 = vand.u32 4294901760, %v6019_v15  ;;  %v6639_v1 = vld [vmem:[%s8724_s6] ss:$0 sm:$0xff] }
 0xebc   :  { %7488 = vmatprep.mubr.f32.mxu1 %v5537_v2  ;;  %v5538_v0 = vsub.f32 %v5463_v63, %v5537_v2 }
 0xebd   :  { %v5466_v51 = vsel %vm65_vm0, %v5450_v48, 0 }
 0xebe   :  { %v5547_v4 = vand.u32 4294901760, %v5466_v51  ;;  %v5539_v5 = vand.u32 4294901760, %v5538_v0 }
 0xec0   :  { %v5548_v3 = vsub.f32 %v5466_v51, %v5547_v4  ;;  %7489 = vmatmul.mubr.f32.vlgmr.msra.gmra.mxu1 %v5547_v4  ;;  %v5540_v6 = vsub.f32 %v5538_v0, %v5539_v5 }
 0xec1   :  { %7503 = vmatpush3.msra.mxu1 %v8420_v28  ;;  %7510 = vmatprep.mubr.f32.mxu1 %v5539_v5 }
 0xec2   :  { %7504 = vmatprep.subr.mxu1 %v8428_v31  ;;  %v5541_v8 = vand.u32 4294901760, %v5540_v6  ;;  %v5549_v9 = vand.u32 4294901760, %v5548_v3 }
 0xec3   :  { %7505 = vmatpush3.msra.mxu1 %v8428_v31 }
 0xec4   :  { %7506 = vmatprep.subr.mxu1 %v8430_v32  ;;  %7477 = vmatprep.mubr.f32.mxu0 %v5541_v8  ;;  %v5550_v7 = vsub.f32 %v5548_v3, %v5549_v9 }
 0xec5   :  { %7507 = vmatpush3.msra.mxu1 %v8430_v32 }
 0xec6   :  { %7508 = vmatprep.subr.mxu1 %v8459_v45  ;;  %v5551_v10 = vand.u32 4294901760, %v5550_v7 }
 0xec7   :  { %7509 = vmatpush3.msra.mxu1 %v8459_v45 }
 0xec8   :  { %7511 = vmatmul.mubr.f32.vlgmr.msra.gmra.mxu1 %v5549_v9  ;;  %7524 = vmatprep.subr.mxu1 %v8420_v28 }
 0xec9   :  { %7478 = vmatmul.mubr.f32.vlgmr.msra.gmra.mxu0 %v5551_v10  ;;  %7525 = vmatpush3.msra.mxu1 %v8420_v28  ;;  %v8561_v28 = vand.u32 4294901760, %v6015_v25 }
 0xeca   :  { %7492 = vmatpush3.msra.mxu0 %v8433_v33  ;;  %7532 = vmatprep.mubr.f32.mxu1 %v5537_v2  ;;  %v8574_v33 = vsub.f32 %v6018_v16, %v8544_v23 }
 0xecb   :  { %7493 = vmatprep.subr.mxu0 %v8437_v34  ;;  %7499 = vmatprep.mubr.f32.mxu0 %v5538_v0 }
 0xecc   :  { %7526 = vmatprep.subr.mxu1 %v8428_v31  ;;  %7494 = vmatpush3.msra.mxu0 %v8437_v34  ;;  %v8578_v34 = vsub.f32 %v6017_v18, %v8556_v17 }
 0xecd   :  { %7527 = vmatpush3.msra.mxu1 %v8428_v31  ;;  %7495 = vmatprep.subr.mxu0 %v8440_v35  ;;  %v8568_v31 = vand.u32 4294901760, %v8540_v21 }
 0xece   :  { %7528 = vmatprep.subr.mxu1 %v8430_v32  ;;  %7496 = vmatpush3.msra.mxu0 %v8440_v35  ;;  %v8581_v35 = vsub.f32 %v6016_v24, %v8558_v27  ;;  %v8600_v46 = vand.u32 4294901760, %v8578_v34 }
 0xecf   :  { %7529 = vmatpush3.msra.mxu1 %v8430_v32  ;;  %7497 = vmatprep.subr.mxu0 %v8468_v50  ;;  %v8571_v32 = vsub.f32 %v6019_v15, %v8542_v22  ;;  %v6156_v43 = vsub.f32 %v8540_v21, %v8568_v31 }
 0xed0   :  { %7530 = vmatprep.subr.mxu1 %v8459_v45  ;;  %7498 = vmatpush3.msra.mxu0 %v8468_v50  ;;  %v8603_v47 = vand.u32 4294901760, %v8581_v35 }
 0xed1   :  { %7531 = vmatpush3.msra.mxu1 %v8459_v45  ;;  %7500 = vmatmul.mubr.f32.vlgmr.msra.gmra.mxu0 %v5548_v3  ;;  %v8593_v44 = vand.u32 4294901760, %v8571_v32  ;;  %v8596_v45 = vand.u32 4294901760, %v8574_v33  ;;  %v6157_v49 = vand.u32 4294901760, %v6156_v43 }
 0xed2   :  { %7513 = vmatprep.subr.mxu0 %v8444_v36  ;;  %7533 = vmatmul.mubr.f32.vlgmr.msra.gmra.mxu1 %v5547_v4  ;;  %v6184_v59 = vsub.f32 %v8581_v35, %v8603_v47 }
 0xed3   :  { %7514 = vmatpush3.msra.mxu0 %v8444_v36  ;;  %7521 = vmatprep.mubr.f32.mxu0 %v5537_v2  ;;  %v8584_v36 = vsub.f32 %v6015_v25, %v8561_v28  ;;  %v6163_v50 = vsub.f32 %v8571_v32, %v8593_v44  ;;  %v6170_v55 = vsub.f32 %v8574_v33, %v8596_v45 }
 0xed4   :  { %7515 = vmatprep.subr.mxu0 %v8448_v37  ;;  %v6185_v58 = vand.u32 4294901760, %v6184_v59 }
 0xed5   :  { %7516 = vmatpush3.msra.mxu0 %v8448_v37  ;;  %v8588_v37 = vsub.f32 %v6014_v26, %v8563_v29  ;;  %v8611_v39 = vand.u32 4294901760, %v8584_v36  ;;  %v6164_v42 = vand.u32 4294901760, %v6163_v50  ;;  %v6171_v57 = vand.u32 4294901760, %v6170_v55 }
 0xed6   :  { %7517 = vmatprep.subr.mxu0 %v8451_v40 }
 0xed7   :  { %7518 = vmatpush3.msra.mxu0 %v8451_v40  ;;  %v6150_v40 = vand.u32 4294901760, %v6149_v30  ;;  %v8619_v60 = vand.u32 4294901760, %v8588_v37  ;;  %v6191_v53 = vsub.f32 %v8584_v36, %v8611_v39 }
 0xed8   :  { %7519 = vmatprep.subr.mxu0 %v8473_v56 }
 0xed9   :  { %7520 = vmatpush3.msra.mxu0 %v8473_v56  ;;  %7554 = vmatprep.subr.mxu1 %v6150_v40  ;;  %v6177_v56 = vsub.f32 %v8578_v34, %v8600_v46  ;;  %v6198_v61 = vsub.f32 %v8588_v37, %v8619_v60  ;;  %v6192_v62 = vand.u32 4294901760, %v6191_v53 }
 0xeda   :  { %7522 = vmatmul.mubr.f32.vlgmr.msra.gmra.mxu0 %v5547_v4  ;;  %7535 = vmatprep.subr.mxu0 %v8515_v12 }
 0xedb   :  { %7536 = vmatpush3.msra.mxu0 %v8515_v12  ;;  %7555 = vmatpush3.msra.mxu1 %v6150_v40  ;;  %v6178_v52 = vand.u32 4294901760, %v6177_v56  ;;  %v6199_v54 = vand.u32 4294901760, %v6198_v61 }
 0xedc   :  { %7537 = vmatprep.subr.mxu0 %v8523_v38  ;;  %7556 = vmatprep.subr.mxu1 %v6157_v49 }
 0xedd   :  { %7538 = vmatpush3.msra.mxu0 %v8523_v38  ;;  %7557 = vmatpush3.msra.mxu1 %v6157_v49 }
 0xede   :  { %7539 = vmatprep.subr.mxu0 %v8542_v22  ;;  %7558 = vmatprep.subr.mxu1 %v6164_v42 }
 0xedf   :  { %7540 = vmatpush3.msra.mxu0 %v8542_v22  ;;  %7559 = vmatpush3.msra.mxu1 %v6164_v42 }
 0xee0   :  { %7541 = vmatprep.subr.mxu0 %v8544_v23  ;;  %7560 = vmatprep.subr.mxu1 %v6171_v57 }
 0xee1   :  { %7542 = vmatpush3.msra.mxu0 %v8544_v23  ;;  %7561 = vmatpush3.msra.mxu1 %v6171_v57 }
 0xee2   :  { %7543 = vmatprep.subr.mxu0 %v8556_v17  ;;  %7562 = vmatprep.subr.mxu1 %v6178_v52 }
 0xee3   :  { %7544 = vmatpush3.msra.mxu0 %v8556_v17  ;;  %7563 = vmatpush3.msra.mxu1 %v6178_v52 }
 0xee4   :  { %7545 = vmatprep.subr.mxu0 %v8558_v27  ;;  %7564 = vmatprep.subr.mxu1 %v6185_v58 }
 0xee5   :  { %7546 = vmatpush3.msra.mxu0 %v8558_v27  ;;  %7565 = vmatpush3.msra.mxu1 %v6185_v58 }
 0xee6   :  { %7547 = vmatprep.subr.mxu0 %v8561_v28  ;;  %7566 = vmatprep.subr.mxu1 %v6192_v62 }
 0xee7   :  { %7548 = vmatpush3.msra.mxu0 %v8561_v28  ;;  %7567 = vmatpush3.msra.mxu1 %v6192_v62 }
 0xee8   :  { %7549 = vmatprep.subr.mxu0 %v8563_v29  ;;  %7568 = vmatprep.subr.mxu1 %v6199_v54 }
 0xee9   :  { %7550 = vmatpush3.msra.mxu0 %v8563_v29  ;;  %7569 = vmatpush3.msra.mxu1 %v6199_v54 }
 0xeea   :  { %7573 = vmatprep.subr.mxu0 %v8521_v14  ;;  %7592 = vmatprep.subr.mxu1 %v8515_v12 }
 0xf80   :  { %v7490_v2 = vpop.f32.mrf.mxu1 }
 0xf82   :  { %v5644_v5 = vpop.f32.mrf.mxu1 }
 0xf88   :  { %v7512_v6 = vpop.f32.mrf.mxu1 }
 0xf89   :  { %v7479_v63 = vpop.f32.mrf.mxu0 }
 0xf8a   :  { %v5554_v0 = vadd.f32 %v7479_v63, %v6639_v1  ;;  %v5814_v11 = vpop.f32.mrf.mxu1 }
 0xf8b   :  { %v5543_v48 = vpop.f32.mrf.mxu0 }
 0xf8c   :  { %v5544_v51 = vadd.f32 %v6639_v1, %v5543_v48  ;;  %v5651_v3 = vadd.f32 %v7490_v2, %v5554_v0 }
 0xf8e   :  { %v5645_v7 = vadd.f32 %v5644_v5, %v5544_v51 }
 0xf91   :  { %v7501_v4 = vpop.f32.mrf.mxu0 }
 0xf92   :  { %v5738_v9 = vadd.f32 %v7501_v4, %v5651_v3  ;;  %v7534_v15 = vpop.f32.mrf.mxu1 }
 0xf93   :  { %v5730_v8 = vpop.f32.mrf.mxu0 }
 0xf94   :  { %v5731_v10 = vadd.f32 %v5730_v8, %v5645_v7  ;;  %v5823_v13 = vadd.f32 %v7512_v6, %v5738_v9  ;;  %v5986_v40 = vpop.f32.mrf.mxu1 }
 0xf96   :  { %v5815_v24 = vadd.f32 %v5814_v11, %v5731_v10 }
 0xf9a   :  { %v7523_v16 = vpop.f32.mrf.mxu0 }
 0xf9b   :  { %v5912_v18 = vadd.f32 %v7523_v16, %v5823_v13 }
 0xf9c   :  { %v5905_v25 = vpop.f32.mrf.mxu0 }
 0xf9d   :  { %v5993_v26 = vadd.f32 %v7534_v15, %v5912_v18  ;;  %v5906_v30 = vadd.f32 %v5905_v25, %v5815_v24 }
 0xf9f   :  { %v5997_v43 = vmul.f32 %v5993_v26, %v5993_v26  ;;  %v5987_v49 = vadd.f32 %v5986_v40, %v5906_v30 }
 0xfa1   :  { %v5999_v50 = vmul.f32 %v5997_v43, %v5993_v26  ;;  %v5996_v55 = vmul.f32 %v5987_v49, %v5987_v49 }
 0xfa3   :  { %v6001_v56 = vmul.f32 0.044715, %v5999_v50  ;;  %v5998_v42 = vmul.f32 %v5996_v55, %v5987_v49 }
 0xfa5   :  { %v6003_v57 = vadd.f32 %v6001_v56, %v5993_v26  ;;  %v6000_v59 = vmul.f32 0.044715, %v5998_v42 }
 0xfa7   :  { %v6005_v52 = vmul.f32 0.7978846, %v6003_v57  ;;  %v6002_v53 = vadd.f32 %v6000_v59, %v5987_v49 }
 0xfa9   :  { %7707 = vtanh.f32 %v6005_v52  ;;  %v6004_v58 = vmul.f32 0.7978846, %v6002_v53 }
 0xfab   :  { %7709 = vtanh.f32 %v6004_v58 }
 0xfb6   :  { %v7708_v61 = vpop.eup %7707 }
 0xfb7   :  { %v6009_v62 = vadd.f32 1.0, %v7708_v61 }
 0xfb8   :  { %v7710_v54 = vpop.eup %7709 }
 0xfb9   :  { %v6008_v63 = vadd.f32 1.0, %v7710_v54  ;;  %v6011_v1 = vmul.f32 0.5, %v6009_v62 }
 0xfbb   :  { %v6010_v2 = vmul.f32 0.5, %v6008_v63  ;;  %v6013_v48 = vmul.f32 %v6011_v1, %v5993_v26 }
 0xfbd   :  { %v6012_v0 = vmul.f32 %v6010_v2, %v5987_v49  ;;  %v6034_v51 = vsel %vm6029_vm4, %v6013_v48, 0 }
 0xfbe   :  { %v8637_v4 = vand.u32 4294901760, %v6034_v51 }
 0xfbf   :  { %v6031_v5 = vsel %vm6029_vm4, %v6012_v0, 0 }
 0xfc0   :  { %v6109_v3 = vand.u32 4294901760, %v6031_v5  ;;  %v6120_v6 = vsub.f32 %v6034_v51, %v8637_v4 }
 0xfc2   :  { %7570 = vmatprep.mubr.f32.mxu1 %v6109_v3  ;;  %v6110_v8 = vsub.f32 %v6031_v5, %v6109_v3  ;;  %v6121_v9 = vand.u32 4294901760, %v6120_v6 }
 0xfc3   :  { %7571 = vmatmul.mubr.f32.vlgmr.msra.gmra.mxu1 %v8637_v4 }
 0xfc4   :  { %7593 = vmatpush3.msra.mxu1 %v8515_v12  ;;  %v6111_v7 = vand.u32 4294901760, %v6110_v8  ;;  %v6122_v10 = vsub.f32 %v6120_v6, %v6121_v9 }
 0xfc5   :  { %7594 = vmatprep.subr.mxu1 %v8523_v38 }
 0xfc6   :  { %7595 = vmatpush3.msra.mxu1 %v8523_v38  ;;  %7608 = vmatprep.mubr.f32.mxu1 %v6111_v7  ;;  %v6112_v11 = vsub.f32 %v6110_v8, %v6111_v7  ;;  %v6123_v15 = vand.u32 4294901760, %v6122_v10 }
 0xfc7   :  { %7596 = vmatprep.subr.mxu1 %v8542_v22 }
 0xfc8   :  { %7597 = vmatpush3.msra.mxu1 %v8542_v22  ;;  %v6113_v13 = vand.u32 4294901760, %v6112_v11 }
 0xfc9   :  { %7598 = vmatprep.subr.mxu1 %v8544_v23 }
 0xfca   :  { %7599 = vmatpush3.msra.mxu1 %v8544_v23  ;;  %7551 = vmatprep.mubr.f32.mxu0 %v6113_v13 }
 0xfcb   :  { %7600 = vmatprep.subr.mxu1 %v8556_v17  ;;  %7552 = vmatmul.mubr.f32.vlgmr.msra.gmra.mxu0 %v6123_v15 }
 0xfcc   :  { %7574 = vmatpush3.msra.mxu0 %v8521_v14  ;;  %7601 = vmatpush3.msra.mxu1 %v8556_v17  ;;  %v6640_v14 = vld [vmem:[%s8726_s8] ss:$0 sm:$0xff]  ;;  %s7798_s8 = smov [#allocation7]  }
 0xfcd   :  { %7575 = vmatprep.subr.mxu0 %v8540_v21  ;;  %7589 = vmatprep.mubr.f32.mxu0 %v6110_v8  ;;  %s6625_s2 = sshll.u32 %s7798_s8, 4  ;;  %s6626_s2 = int_to_ptr.vmem [resolvable:$true] %s6625_s2 }
 0xfce   :  { %7602 = vmatprep.subr.mxu1 %v8558_v27  ;;  %7576 = vmatpush3.msra.mxu0 %v8540_v21  ;;  %s7755_s27 = scalar_lea.vmem %s6626_s2, 256  ;;  %p7760_p11 = scmp.lt.s32.totalorder %s6626_s2, %s6626_s2 }
 0xfcf   :  { %7603 = vmatpush3.msra.mxu1 %v8558_v27  ;;  %7577 = vmatprep.subr.mxu0 %v8571_v32  ;;  %p7756_p10 = scmp.ne.s32.totalorder %s6626_s2, %s7755_s27  ;;  %p7761_p12 = scmp.lt.s32.totalorder %s7755_s27, %s7755_s27 }
 0xfd0   :  { %7604 = vmatprep.subr.mxu1 %v8561_v28  ;;  %7578 = vmatpush3.msra.mxu0 %v8571_v32 }
 0xfd1   :  { %7605 = vmatpush3.msra.mxu1 %v8561_v28  ;;  %7579 = vmatprep.subr.mxu0 %v8574_v33  ;;  %p7762_p13 = por %p7761_p12, %p7760_p11 }
 0xfd2   :  { %7606 = vmatprep.subr.mxu1 %v8563_v29  ;;  %7580 = vmatpush3.msra.mxu0 %v8574_v33 }
 0xfd3   :  { %7607 = vmatpush3.msra.mxu1 %v8563_v29  ;;  %7581 = vmatprep.subr.mxu0 %v8578_v34  ;;  %p7763_p0 = pnand %p7762_p13, %p7756_p10 }
 0xfd4   :  { %7609 = vmatmul.mubr.f32.vlgmr.msra.gmra.mxu1 %v6121_v9  ;;  %7630 = vmatprep.subr.mxu1 %v8515_v12 }
 0xfd5   :  { %7582 = vmatpush3.msra.mxu0 %v8578_v34  ;;  %7631 = vmatpush3.msra.mxu1 %v8515_v12 }
 0xfd6   :  { %7646 = vmatprep.mubr.f32.mxu1 %v6109_v3  ;;  %7583 = vmatprep.subr.mxu0 %v8581_v35 }
 0xfd7   :  { %7632 = vmatprep.subr.mxu1 %v8523_v38  ;;  %7584 = vmatpush3.msra.mxu0 %v8581_v35 }
 0xfd8   :  { %7633 = vmatpush3.msra.mxu1 %v8523_v38  ;;  %7585 = vmatprep.subr.mxu0 %v8584_v36 }
 0xfd9   :  { %7634 = vmatprep.subr.mxu1 %v8542_v22  ;;  %7586 = vmatpush3.msra.mxu0 %v8584_v36 }
 0xfda   :  { %7635 = vmatpush3.msra.mxu1 %v8542_v22  ;;  %7587 = vmatprep.subr.mxu0 %v8588_v37 }
 0xfdb   :  { %7636 = vmatprep.subr.mxu1 %v8544_v23  ;;  %7588 = vmatpush3.msra.mxu0 %v8588_v37 }
 0xfdc   :  { %7637 = vmatpush3.msra.mxu1 %v8544_v23  ;;  %7590 = vmatmul.mubr.f32.vlgmr.msra.gmra.mxu0 %v6120_v6 }
 0xfdd   :  { %7611 = vmatprep.subr.mxu0 %v8537_v19  ;;  %7638 = vmatprep.subr.mxu1 %v8556_v17 }
 0xfde   :  { %7612 = vmatpush3.msra.mxu0 %v8537_v19  ;;  %7627 = vmatprep.mubr.f32.mxu0 %v6109_v3 }
 0xfdf   :  { %7639 = vmatpush3.msra.mxu1 %v8556_v17  ;;  %7613 = vmatprep.subr.mxu0 %v8568_v31 }
 0xfe0   :  { %7640 = vmatprep.subr.mxu1 %v8558_v27  ;;  %7614 = vmatpush3.msra.mxu0 %v8568_v31 }
 0xfe1   :  { %7641 = vmatpush3.msra.mxu1 %v8558_v27  ;;  %7615 = vmatprep.subr.mxu0 %v8593_v44 }
 0xfe2   :  { %7642 = vmatprep.subr.mxu1 %v8561_v28  ;;  %7616 = vmatpush3.msra.mxu0 %v8593_v44 }
 0xfe3   :  { %7643 = vmatpush3.msra.mxu1 %v8561_v28  ;;  %7617 = vmatprep.subr.mxu0 %v8596_v45 }
 0xfe4   :  { %7644 = vmatprep.subr.mxu1 %v8563_v29  ;;  %7618 = vmatpush3.msra.mxu0 %v8596_v45 }
 0xfe5   :  { %7645 = vmatpush3.msra.mxu1 %v8563_v29  ;;  %7619 = vmatprep.subr.mxu0 %v8600_v46 }
 0xfe6   :  { %7647 = vmatmul.mubr.f32.vlgmr.msra.gmra.mxu1 %v8637_v4  ;;  %7620 = vmatpush3.msra.mxu0 %v8600_v46 }
 0xfe7   :  { %7621 = vmatprep.subr.mxu0 %v8603_v47 }
 0xfe8   :  { %7622 = vmatpush3.msra.mxu0 %v8603_v47 }
 0xfe9   :  { %7623 = vmatprep.subr.mxu0 %v8611_v39 }
 0xfea   :  { %7624 = vmatpush3.msra.mxu0 %v8611_v39 }
 0xfeb   :  { %7625 = vmatprep.subr.mxu0 %v8619_v60 }
 0xfec   :  { %7626 = vmatpush3.msra.mxu0 %v8619_v60 }
 0xfed   :  { %7628 = vmatmul.mubr.f32.vlgmr.msra.gmra.mxu0 %v8637_v4 }
0x1083   :  { %v7572_v38 = vpop.f32.mrf.mxu1 }
0x1085   :  { %v6236_v17 = vpop.f32.mrf.mxu1 }
0x108b   :  { %v7553_v12 = vpop.f32.mrf.mxu0 }
0x108c   :  { %v6126_v21 = vadd.f32 %v7553_v12, %v6640_v14 }
0x108d   :  { %v6115_v19 = vpop.f32.mrf.mxu0 }
0x108e   :  { %v6116_v23 = vadd.f32 %v6640_v14, %v6115_v19  ;;  %v6243_v27 = vadd.f32 %v7572_v38, %v6126_v21 }
0x1090   :  { %v6237_v32 = vadd.f32 %v6236_v17, %v6116_v23 }
0x1094   :  { %v7610_v28 = vpop.f32.mrf.mxu1 }
0x1096   :  { %v6418_v34 = vpop.f32.mrf.mxu1 }
0x109c   :  { %v7591_v22 = vpop.f32.mrf.mxu0 }
0x109d   :  { %v6338_v31 = vadd.f32 %v7591_v22, %v6243_v27 }
0x109e   :  { %v6330_v29 = vpop.f32.mrf.mxu0 }
0x109f   :  { %v6331_v33 = vadd.f32 %v6330_v29, %v6237_v32  ;;  %v6427_v35 = vadd.f32 %v7610_v28, %v6338_v31 }
0x10a1   :  { %v6419_v45 = vadd.f32 %v6418_v34, %v6331_v33 }
0x10a6   :  { %v7648_v36 = vpop.f32.mrf.mxu1 }
0x10a8   :  { %v6606_v60 = vpop.f32.mrf.mxu1 }
0x10ad   :  { %v7629_v37 = vpop.f32.mrf.mxu0 }
0x10ae   :  { %v6528_v44 = vadd.f32 %v7629_v37, %v6427_v35 }
0x10af   :  { %v6521_v46 = vpop.f32.mrf.mxu0 }
0x10b0   :  { %v6613_v47 = vadd.f32 %v7648_v36, %v6528_v44  ;;  %v6522_v39 = vadd.f32 %v6521_v46, %v6419_v45 }
0x10b2   :  { %v6617_v16 = vadd.f32 %v6613_v47, %v8401_v20  ;;  %v6607_v18 = vadd.f32 %v6606_v60, %v6522_v39 }
0x10b4   :  { %6619 = vst.msk [vmem:[#allocation7 + $0x8] sm:$0xff] %vm65_vm0, %v6617_v16  ;;  %v6616_v24 = vadd.f32 %v6607_v18, %v8403_v41 }
0x10b6   :  { %6618 = vst.msk [vmem:[#allocation7] sm:$0xff] %vm65_vm0, %v6616_v24 }
0x10b7   :  { %7766 = shalt.err (!%p7763_p0)
}
0x10b8   :  { %6631 = dma.vmem_to_hbm [thread:$0]  %s6626_s2, 256, %s8727_s9, [#allocation4], %s7782_s12, %s7782_s12, %s7783_s13  }
0x10b9   :  { %7779 = dma.done.wait [#allocation4], 256  }
0x10ba   :  { %7780 = vsyncadd [#allocation4], 4294967040 }
0x10bb   :  { %6635 = vsyncpa [#allocation3], 1 }
0x10bc   :  { %6636 = vsyncpa [#allocation6], 1 }
0x10bd   :  { %6637 = vsyncpa [#allocation4], 1 }

</bundles_post_ra>
